<compile_context>
chip_gen: v6e
topology: v6e:2x2x1
jax: 0.10.0
libtpu: 0.0.40
codegen_flags: <defaults>
</compile_context>

<pallas_src>
import jax
import jax.numpy as jnp
from jax.experimental import pallas as pl
from jax.experimental.pallas import tpu as pltpu

# ---- small synthetic CLIP-text config ---------------------------------------
VOCAB = 100
MAX_POS = 16
D = 64            # hidden size
NUM_HEADS = 4
HEAD_DIM = D // NUM_HEADS
DFF = 128         # intermediate size
NUM_LAYERS = 2
LN_EPS = 1e-5
NEG = -1e9        # large negative for masking (stand-in for torch.finfo(f32).min)

# packed small-parameter slab layout: (L, SLAB_ROWS, SLAB_W) f32
SLAB_W = max(DFF, 128)
ROW_LN1_G, ROW_LN1_B, ROW_LN2_G, ROW_LN2_B, ROW_BO, ROW_B2, ROW_B1 = range(7)
SLAB_ROWS = 8     # row 7 is padding


# ---- fused Pallas kernel ------------------------------------------------------
def fused_encoder_kernel(x_ref, pad_ref, w_qkv, b_qkv, w_o, w_1, w_2, slab, lnf,
                         out_ref):
    """Whole CLIP text transformer for one block of batch elements.

    x_ref:   (Bt, S, D) f32 activations.
    pad_ref: (Bt, S) f32 additive key-padding bias (0 valid, NEG padded).
    w_qkv:   (L, D, 3D) bf16 fused QKV weight (1/sqrt(Dh) folded into Q part).
    b_qkv:   (L, 1, 3D) f32 fused QKV bias (Q part pre-scaled).
    w_o/w_1/w_2: (L, D, D)/(L, D, DFF)/(L, DFF, D) bf16.
    slab:    (L, 8, 128) f32 packed LN gains/biases + small biases.
    lnf:     (2, D) f32 final LayerNorm gain / bias.
    """
    f32 = jnp.float32
    bf16 = jnp.bfloat16
    BT, S, _ = x_ref.shape
    R = BT * S

    x = x_ref[...].reshape(R, D).astype(f32)            # (R, D) flattened rows
    pad = pad_ref[...]                                   # (Bt, S)

    # additive attention bias (causal + key padding), hoisted out of the layer loop
    qi = jax.lax.broadcasted_iota(jnp.int32, (S, S), 0)
    kj = jax.lax.broadcasted_iota(jnp.int32, (S, S), 1)
    causal = jnp.where(kj > qi, NEG, 0.0).astype(f32)    # (S, S)
    bias = causal[None, :, :] + pad[:, None, :]          # (Bt, S, S)

    sl = slab[...]                                       # (L, 8, 128) f32
    lf = lnf[...]                                        # (2, D) f32

    def layer_norm(v, g, b):
        mu = jnp.mean(v, axis=-1, keepdims=True)
        var = jnp.mean((v - mu) ** 2, axis=-1, keepdims=True)
        return (v - mu) * jax.lax.rsqrt(var + LN_EPS) * g + b

    dn_qk = (((2,), (2,)), ((0,), (0,)))   # (Bt,S,Dh) x (Bt,S,Dh) -> (Bt,S,S)
    dn_pv = (((2,), (1,)), ((0,), (0,)))   # (Bt,S,S)  x (Bt,S,Dh) -> (Bt,S,Dh)

    for l in range(NUM_LAYERS):            # static unroll; weights stay resident
        ln1_g = sl[l, ROW_LN1_G:ROW_LN1_G + 1, :D]
        ln1_b = sl[l, ROW_LN1_B:ROW_LN1_B + 1, :D]
        ln2_g = sl[l, ROW_LN2_G:ROW_LN2_G + 1, :D]
        ln2_b = sl[l, ROW_LN2_B:ROW_LN2_B + 1, :D]
        b_o = sl[l, ROW_BO:ROW_BO + 1, :D]
        b_2 = sl[l, ROW_B2:ROW_B2 + 1, :D]
        b_1 = sl[l, ROW_B1:ROW_B1 + 1, :DFF]

        # --- self-attention block (pre-LN) ---
        h = layer_norm(x, ln1_g, ln1_b)                               # (R, D) f32
        qkv = jnp.dot(h.astype(bf16), w_qkv[l],
                      preferred_element_type=f32) + b_qkv[l]          # (R, 3D) f32
        qkv = qkv.astype(bf16)                                        # single cast

        ctx_heads = []
        for hh in range(NUM_HEADS):                                   # static unroll
            lo = hh * HEAD_DIM
            q_h = qkv[:, lo:lo + HEAD_DIM].reshape(BT, S, HEAD_DIM)
            k_h = qkv[:, D + lo:D + lo + HEAD_DIM].reshape(BT, S, HEAD_DIM)
            v_h = qkv[:, 2 * D + lo:2 * D + lo + HEAD_DIM].reshape(BT, S, HEAD_DIM)
            s_h = jax.lax.dot_general(q_h, k_h, dn_qk,
                                      preferred_element_type=f32) + bias
            s_h = s_h - jnp.max(s_h, axis=-1, keepdims=True)
            p_h = jnp.exp(s_h)
            p_h = p_h * pl.reciprocal(jnp.sum(p_h, axis=-1, keepdims=True),
                                      approx=True)
            ctx_heads.append(jax.lax.dot_general(p_h.astype(bf16), v_h, dn_pv,
                                                 preferred_element_type=f32))

        ctx = jnp.concatenate(ctx_heads, axis=-1).reshape(R, D).astype(bf16)
        attn = jnp.dot(ctx, w_o[l], preferred_element_type=f32) + b_o  # K = H*Dh
        h1 = x + attn

        # --- MLP block (pre-LN) ---
        h2 = layer_norm(h1, ln2_g, ln2_b)
        ff = jnp.dot(h2.astype(bf16), w_1[l], preferred_element_type=f32) + b_1
        ff = ff * jax.nn.sigmoid(1.702 * ff)                          # quick_gelu
        ff = jnp.dot(ff.astype(bf16), w_2[l], preferred_element_type=f32) + b_2
        x = h1 + ff

    out = layer_norm(x, lf[0:1], lf[1:2])
    # TODO(synk): at D=64 this store is sub-128-lane (masked); at real CLIP-base
    # D=512 it is already lane-dense, so no in-kernel relayout is done here.
    out_ref[...] = out.reshape(BT, S, D).astype(out_ref.dtype)


# ---- wrapper ------------------------------------------------------------------
def text_encoder_forward(params, input_ids, attention_mask):
    """Equivalent of TextEncoder.forward -> last_hidden_state, shape (B, S, D)."""
    B, S = input_ids.shape
    # embeddings (gather is glue; kept in plain JAX)
    hidden = params['tok_emb'][input_ids] + params['pos_emb'][jnp.arange(S)][None]
    # additive key-padding bias row, (B, S): 0 where valid, NEG where padded
    pad_bias = (1.0 - attention_mask.astype(jnp.float32)) * NEG

    # Block as many batch elements per grid step as fit ~256 matmul rows (fills
    # v6e/v7x MXU; v5e saturates at 128).  At B=2, S=8 this collapses the grid to
    # a single step: one launch, weights DMA'd exactly once.
    bt = max(1, min(B, 256 // S))
    while B % bt:
        bt -= 1
    n_blk = B // bt

    args = (hidden, pad_bias,
            params['w_qkv'], params['b_qkv'], params['w_o'],
            params['w_1'], params['w_2'], params['slab'], params['lnf'])

    in_specs = [pl.BlockSpec((bt, S, D), lambda b: (b, 0, 0)),
                pl.BlockSpec((bt, S), lambda b: (b, 0))]
    # stacked weights: full-array blocks, constant index_map => DMA'd once and
    # VMEM-resident; single-buffer them when the grid actually loops.
    for a in args[2:]:
        imap = lambda b, _n=a.ndim: (0,) * _n
        if n_blk > 1 and hasattr(pl, "Buffered"):
            in_specs.append(pl.BlockSpec(a.shape, imap, pipeline_mode=pl.Buffered(1)))
        else:
            in_specs.append(pl.BlockSpec(a.shape, imap))

    return pl.pallas_call(
        fused_encoder_kernel,
        out_shape=jax.ShapeDtypeStruct((B, S, D), jnp.float32),
        grid=(n_blk,),
        in_specs=in_specs,
        out_specs=pl.BlockSpec((bt, S, D), lambda b: (b, 0, 0)),
        compiler_params=pltpu.CompilerParams(
            # TODO(synk): at real CLIP-base scale, stream per-layer weights (grid L
            # axis / emit_pipeline) for v7x's 64 MiB VMEM, raise vmem_limit_bytes if
            # keeping all layers resident on v5e/v6e, and use CORE_PARALLEL on the
            # batch-block axis so both v7x TensorCores are used.
            dimension_semantics=("parallel",),
            vmem_limit_bytes=32 * 1024 * 1024),
    )(*args)


# ---- parameter init / packing --------------------------------------------------
def init_params(key):
    """Deterministic synthetic CLIP-text weights, packed for the fused kernel:
       - per-layer tensors stacked on a leading L axis,
       - Q/K/V fused into one (D, 3D) weight + (1, 3D) bias, q-scale folded in,
       - output / MLP weights kept full-width, all matmul weights bf16,
       - LN params + small biases packed into one (L, 8, 128) f32 slab."""
    keys = iter(jax.random.split(key, 2 + NUM_LAYERS * 6))
    nk = lambda: next(keys)
    std = 0.02
    scale = HEAD_DIM ** -0.5
    bf16 = jnp.bfloat16

    def pad_row(v):
        return jnp.pad(v, (0, SLAB_W - v.shape[0]))

    w_qkv_l, b_qkv_l, w_o_l, w_1_l, w_2_l, slab_l = ([] for _ in range(6))
    for _ in range(NUM_LAYERS):
        wq = jax.random.normal(nk(), (D, D), jnp.float32) * std
        wk = jax.random.normal(nk(), (D, D), jnp.float32) * std
        wv = jax.random.normal(nk(), (D, D), jnp.float32) * std
        wo = jax.random.normal(nk(), (D, D), jnp.float32) * std
        w1 = jax.random.normal(nk(), (D, DFF), jnp.float32) * std
        w2 = jax.random.normal(nk(), (DFF, D), jnp.float32) * std
        bq = jnp.zeros((D,), jnp.float32)
        bk = jnp.zeros((D,), jnp.float32)
        bv = jnp.zeros((D,), jnp.float32)
        bo = jnp.zeros((D,), jnp.float32)
        b1 = jnp.zeros((DFF,), jnp.float32)
        b2 = jnp.zeros((D,), jnp.float32)

        # fused QKV weight/bias, 1/sqrt(Dh) folded into the Q columns / Q bias
        w_qkv_l.append(jnp.concatenate([wq * scale, wk, wv], axis=1).astype(bf16))
        b_qkv_l.append(jnp.concatenate([bq * scale, bk, bv]).reshape(1, 3 * D))
        w_o_l.append(wo.astype(bf16))
        w_1_l.append(w1.astype(bf16))
        w_2_l.append(w2.astype(bf16))

        rows = [pad_row(jnp.ones((D,), jnp.float32)),    # ln1_g
                pad_row(jnp.zeros((D,), jnp.float32)),   # ln1_b
                pad_row(jnp.ones((D,), jnp.float32)),    # ln2_g
                pad_row(jnp.zeros((D,), jnp.float32)),   # ln2_b
                pad_row(bo),                             # attn out-proj bias
                pad_row(b2),                             # MLP fc2 bias
                pad_row(b1),                             # MLP fc1 bias (width DFF)
                jnp.zeros((SLAB_W,), jnp.float32)]       # padding row
        slab_l.append(jnp.stack(rows))

    params = {
        'w_qkv': jnp.stack(w_qkv_l),
        'b_qkv': jnp.stack(b_qkv_l),
        'w_o': jnp.stack(w_o_l),
        'w_1': jnp.stack(w_1_l),
        'w_2': jnp.stack(w_2_l),
        'slab': jnp.stack(slab_l),
        'lnf': jnp.stack([jnp.ones((D,), jnp.float32),
                          jnp.zeros((D,), jnp.float32)]),
        'tok_emb': jax.random.normal(nk(), (VOCAB, D), jnp.float32) * std,
        'pos_emb': jax.random.normal(nk(), (MAX_POS, D), jnp.float32) * std,
    }
    return params


if __name__ == "__main__":
    key = jax.random.PRNGKey(0)
    k_param, k_ids = jax.random.split(key)

    B, S = 2, 8
    params = init_params(k_param)

    input_ids = jax.random.randint(k_ids, (B, S), 0, VOCAB, dtype=jnp.int32)
    # sample 0: full length, sample 1: last 3 tokens are padding
    attention_mask = jnp.array([[1, 1, 1, 1, 1, 1, 1, 1],
                                [1, 1, 1, 1, 1, 0, 0, 0]], dtype=jnp.int32)

    last_hidden_state = text_encoder_forward(params, input_ids, attention_mask)
    jax.block_until_ready(last_hidden_state)
    assert last_hidden_state.shape == (B, S, D)
    assert bool(jnp.all(jnp.isfinite(last_hidden_state)))
    print("KERNEL_OK")
</pallas_src>

<mosaic_0001>
module attributes {stable_mosaic.version = 11 : i64} {
  func.func @fused_encoder_kernel(%arg0: i32, %arg1: memref<2x8x64xf32, #tpu.memory_space<vmem>>, %arg2: memref<2x8xf32, #tpu.memory_space<vmem>>, %arg3: memref<2x64x192xbf16, #tpu.memory_space<vmem>>, %arg4: memref<2x1x192xf32, #tpu.memory_space<vmem>>, %arg5: memref<2x64x64xbf16, #tpu.memory_space<vmem>>, %arg6: memref<2x64x128xbf16, #tpu.memory_space<vmem>>, %arg7: memref<2x128x64xbf16, #tpu.memory_space<vmem>>, %arg8: memref<2x8x128xf32, #tpu.memory_space<vmem>>, %arg9: memref<2x64xf32, #tpu.memory_space<vmem>>, %arg10: memref<2x8x64xf32, #tpu.memory_space<vmem>>) attributes {dimension_semantics = [#tpu.dimension_semantics<parallel>], iteration_bounds = array<i64: 1>, scalar_prefetch = 0 : i64, scratch_operands = 0 : i64, tpu.core_type = #tpu.core_type<tc>, window_params = [{transform_indices = @transform_0, window_bounds = array<i64: 2, 8, 64>}, {transform_indices = @transform_1, window_bounds = array<i64: 2, 8>}, {pipeline_mode = #tpu.pipeline_mode<synchronous>, transform_indices = @transform_2, window_bounds = array<i64: 2, 64, 192>}, {pipeline_mode = #tpu.pipeline_mode<synchronous>, transform_indices = @transform_3, window_bounds = array<i64: 2, 1, 192>}, {pipeline_mode = #tpu.pipeline_mode<synchronous>, transform_indices = @transform_4, window_bounds = array<i64: 2, 64, 64>}, {pipeline_mode = #tpu.pipeline_mode<synchronous>, transform_indices = @transform_5, window_bounds = array<i64: 2, 64, 128>}, {pipeline_mode = #tpu.pipeline_mode<synchronous>, transform_indices = @transform_6, window_bounds = array<i64: 2, 128, 64>}, {pipeline_mode = #tpu.pipeline_mode<synchronous>, transform_indices = @transform_7, window_bounds = array<i64: 2, 8, 128>}, {pipeline_mode = #tpu.pipeline_mode<synchronous>, transform_indices = @transform_8, window_bounds = array<i64: 2, 64>}, {transform_indices = @transform_9, window_bounds = array<i64: 2, 8, 64>}]} {
    %c0 = arith.constant 0 : index
    %c0_0 = arith.constant 0 : index
    %c0_1 = arith.constant 0 : index
    %0 = vector.load %arg1[%c0, %c0_0, %c0_1] : memref<2x8x64xf32, #tpu.memory_space<vmem>>, vector<2x8x64xf32>
    %1 = vector.shape_cast %0 : vector<2x8x64xf32> to vector<16x64xf32>
    %c0_2 = arith.constant 0 : index
    %c0_3 = arith.constant 0 : index
    %2 = vector.load %arg2[%c0_2, %c0_3] : memref<2x8xf32, #tpu.memory_space<vmem>>, vector<2x8xf32>
    %3 = tpu.iota {dimensions = array<i32: 0>} : vector<8x8xi32>
    %4 = tpu.iota {dimensions = array<i32: 1>} : vector<8x8xi32>
    %5 = arith.cmpi sgt, %4, %3 : vector<8x8xi32>
    %cst = arith.constant -1.000000e+09 : f32
    %cst_4 = arith.constant 0.000000e+00 : f32
    %6 = vector.broadcast %cst : f32 to vector<8x8xf32>
    %7 = vector.broadcast %cst_4 : f32 to vector<8x8xf32>
    %8 = arith.select %5, %6, %7 : vector<8x8xi1>, vector<8x8xf32>
    %9 = vector.shape_cast %8 : vector<8x8xf32> to vector<1x8x8xf32>
    %10 = vector.shape_cast %2 : vector<2x8xf32> to vector<2x1x8xf32>
    %11 = vector.broadcast %9 : vector<1x8x8xf32> to vector<2x8x8xf32>
    %12 = vector.broadcast %10 : vector<2x1x8xf32> to vector<2x8x8xf32>
    %13 = arith.addf %11, %12 : vector<2x8x8xf32>
    %c0_5 = arith.constant 0 : index
    %c0_6 = arith.constant 0 : index
    %c0_7 = arith.constant 0 : index
    %14 = vector.load %arg8[%c0_5, %c0_6, %c0_7] : memref<2x8x128xf32, #tpu.memory_space<vmem>>, vector<2x8x128xf32>
    %c0_8 = arith.constant 0 : index
    %c0_9 = arith.constant 0 : index
    %15 = vector.load %arg9[%c0_8, %c0_9] : memref<2x64xf32, #tpu.memory_space<vmem>>, vector<2x64xf32>
    %16 = vector.extract_strided_slice %14 {offsets = [0, 0, 0], sizes = [1, 1, 64], strides = [1, 1, 1]} : vector<2x8x128xf32> to vector<1x1x64xf32>
    %17 = vector.shape_cast %16 : vector<1x1x64xf32> to vector<1x64xf32>
    %18 = vector.extract_strided_slice %14 {offsets = [0, 1, 0], sizes = [1, 1, 64], strides = [1, 1, 1]} : vector<2x8x128xf32> to vector<1x1x64xf32>
    %19 = vector.shape_cast %18 : vector<1x1x64xf32> to vector<1x64xf32>
    %20 = vector.extract_strided_slice %14 {offsets = [0, 2, 0], sizes = [1, 1, 64], strides = [1, 1, 1]} : vector<2x8x128xf32> to vector<1x1x64xf32>
    %21 = vector.shape_cast %20 : vector<1x1x64xf32> to vector<1x64xf32>
    %22 = vector.extract_strided_slice %14 {offsets = [0, 3, 0], sizes = [1, 1, 64], strides = [1, 1, 1]} : vector<2x8x128xf32> to vector<1x1x64xf32>
    %23 = vector.shape_cast %22 : vector<1x1x64xf32> to vector<1x64xf32>
    %24 = vector.extract_strided_slice %14 {offsets = [0, 4, 0], sizes = [1, 1, 64], strides = [1, 1, 1]} : vector<2x8x128xf32> to vector<1x1x64xf32>
    %25 = vector.shape_cast %24 : vector<1x1x64xf32> to vector<1x64xf32>
    %26 = vector.extract_strided_slice %14 {offsets = [0, 5, 0], sizes = [1, 1, 64], strides = [1, 1, 1]} : vector<2x8x128xf32> to vector<1x1x64xf32>
    %27 = vector.shape_cast %26 : vector<1x1x64xf32> to vector<1x64xf32>
    %28 = vector.extract_strided_slice %14 {offsets = [0, 6, 0], sizes = [1, 1, 128], strides = [1, 1, 1]} : vector<2x8x128xf32> to vector<1x1x128xf32>
    %29 = vector.shape_cast %28 : vector<1x1x128xf32> to vector<1x128xf32>
    %cst_10 = arith.constant dense<0.000000e+00> : vector<16xf32>
    %30 = vector.multi_reduction <add>, %1, %cst_10 [1] : vector<16x64xf32> to vector<16xf32>
    %31 = vector.shape_cast %30 : vector<16xf32> to vector<16x1xf32>
    %cst_11 = arith.constant 6.400000e+01 : f32
    %32 = vector.broadcast %cst_11 : f32 to vector<16x1xf32>
    %33 = arith.divf %31, %32 : vector<16x1xf32>
    %34 = vector.broadcast %33 : vector<16x1xf32> to vector<16x64xf32>
    %35 = arith.subf %1, %34 : vector<16x64xf32>
    %36 = arith.mulf %35, %35 : vector<16x64xf32>
    %cst_12 = arith.constant dense<0.000000e+00> : vector<16xf32>
    %37 = vector.multi_reduction <add>, %36, %cst_12 [1] : vector<16x64xf32> to vector<16xf32>
    %38 = vector.shape_cast %37 : vector<16xf32> to vector<16x1xf32>
    %cst_13 = arith.constant 6.400000e+01 : f32
    %39 = vector.broadcast %cst_13 : f32 to vector<16x1xf32>
    %40 = arith.divf %38, %39 : vector<16x1xf32>
    %41 = vector.broadcast %33 : vector<16x1xf32> to vector<16x64xf32>
    %42 = arith.subf %1, %41 : vector<16x64xf32>
    %cst_14 = arith.constant 9.99999974E-6 : f32
    %43 = vector.broadcast %cst_14 : f32 to vector<16x1xf32>
    %44 = arith.addf %40, %43 : vector<16x1xf32>
    %45 = math.rsqrt %44 : vector<16x1xf32>
    %46 = vector.broadcast %45 : vector<16x1xf32> to vector<16x64xf32>
    %47 = arith.mulf %42, %46 : vector<16x64xf32>
    %48 = vector.broadcast %17 : vector<1x64xf32> to vector<16x64xf32>
    %49 = arith.mulf %47, %48 : vector<16x64xf32>
    %50 = vector.broadcast %19 : vector<1x64xf32> to vector<16x64xf32>
    %51 = arith.addf %49, %50 : vector<16x64xf32>
    %52 = arith.truncf %51 : vector<16x64xf32> to vector<16x64xbf16>
    %c0_15 = arith.constant 0 : index
    %c0_16 = arith.constant 0 : index
    %c0_17 = arith.constant 0 : index
    %53 = vector.load %arg3[%c0_15, %c0_16, %c0_17] : memref<2x64x192xbf16, #tpu.memory_space<vmem>>, vector<1x64x192xbf16>
    %54 = vector.shape_cast %53 : vector<1x64x192xbf16> to vector<64x192xbf16>
    %cst_18 = arith.constant dense<0.000000e+00> : vector<16x192xf32>
    %55 = tpu.matmul %52, %54, %cst_18 {dimension_numbers = #tpu.dot_dimension_numbers<[1], [0], [0], [1], [0, 0, 1, 1], [], []>} : vector<16x64xbf16>, vector<64x192xbf16>, vector<16x192xf32> -> vector<16x192xf32>
    %c0_19 = arith.constant 0 : index
    %c0_20 = arith.constant 0 : index
    %c0_21 = arith.constant 0 : index
    %56 = vector.load %arg4[%c0_19, %c0_20, %c0_21] : memref<2x1x192xf32, #tpu.memory_space<vmem>>, vector<1x1x192xf32>
    %57 = vector.shape_cast %56 : vector<1x1x192xf32> to vector<1x192xf32>
    %58 = vector.broadcast %57 : vector<1x192xf32> to vector<16x192xf32>
    %59 = arith.addf %55, %58 : vector<16x192xf32>
    %60 = arith.truncf %59 : vector<16x192xf32> to vector<16x192xbf16>
    %61 = vector.extract_strided_slice %60 {offsets = [0, 0], sizes = [16, 16], strides = [1, 1]} : vector<16x192xbf16> to vector<16x16xbf16>
    %62 = vector.shape_cast %61 : vector<16x16xbf16> to vector<2x8x16xbf16>
    %63 = vector.extract_strided_slice %60 {offsets = [0, 64], sizes = [16, 16], strides = [1, 1]} : vector<16x192xbf16> to vector<16x16xbf16>
    %64 = vector.shape_cast %63 : vector<16x16xbf16> to vector<2x8x16xbf16>
    %65 = vector.extract_strided_slice %60 {offsets = [0, 128], sizes = [16, 16], strides = [1, 1]} : vector<16x192xbf16> to vector<16x16xbf16>
    %66 = vector.shape_cast %65 : vector<16x16xbf16> to vector<2x8x16xbf16>
    %cst_22 = arith.constant dense<0.000000e+00> : vector<2x8x8xf32>
    %67 = tpu.matmul %62, %64, %cst_22 {dimension_numbers = #tpu.dot_dimension_numbers<[2], [2], [1], [1], [0, 0, 0, 1, 1, 1], [0], [0]>} : vector<2x8x16xbf16>, vector<2x8x16xbf16>, vector<2x8x8xf32> -> vector<2x8x8xf32>
    %68 = arith.addf %67, %13 : vector<2x8x8xf32>
    %cst_23 = arith.constant dense<0xFF800000> : vector<2x8xf32>
    %69 = vector.multi_reduction <maximumf>, %68, %cst_23 [2] : vector<2x8x8xf32> to vector<2x8xf32>
    %70 = vector.shape_cast %69 : vector<2x8xf32> to vector<2x8x1xf32>
    %71 = vector.broadcast %70 : vector<2x8x1xf32> to vector<2x8x8xf32>
    %72 = arith.subf %68, %71 : vector<2x8x8xf32>
    %73 = math.exp %72 : vector<2x8x8xf32>
    %cst_24 = arith.constant dense<0.000000e+00> : vector<2x8xf32>
    %74 = vector.multi_reduction <add>, %73, %cst_24 [2] : vector<2x8x8xf32> to vector<2x8xf32>
    %75 = vector.shape_cast %74 : vector<2x8xf32> to vector<2x8x1xf32>
    %76 = tpu.reciprocal %75 {approx = true} : vector<2x8x1xf32> -> vector<2x8x1xf32>
    %77 = vector.broadcast %76 : vector<2x8x1xf32> to vector<2x8x8xf32>
    %78 = arith.mulf %73, %77 : vector<2x8x8xf32>
    %79 = arith.truncf %78 : vector<2x8x8xf32> to vector<2x8x8xbf16>
    %cst_25 = arith.constant dense<0.000000e+00> : vector<2x8x16xf32>
    %80 = tpu.matmul %79, %66, %cst_25 {dimension_numbers = #tpu.dot_dimension_numbers<[2], [1], [1], [2], [0, 0, 0, 1, 1, 2], [0], [0]>} : vector<2x8x8xbf16>, vector<2x8x16xbf16>, vector<2x8x16xf32> -> vector<2x8x16xf32>
    %81 = vector.extract_strided_slice %60 {offsets = [0, 16], sizes = [16, 16], strides = [1, 1]} : vector<16x192xbf16> to vector<16x16xbf16>
    %82 = vector.shape_cast %81 : vector<16x16xbf16> to vector<2x8x16xbf16>
    %83 = vector.extract_strided_slice %60 {offsets = [0, 80], sizes = [16, 16], strides = [1, 1]} : vector<16x192xbf16> to vector<16x16xbf16>
    %84 = vector.shape_cast %83 : vector<16x16xbf16> to vector<2x8x16xbf16>
    %85 = vector.extract_strided_slice %60 {offsets = [0, 144], sizes = [16, 16], strides = [1, 1]} : vector<16x192xbf16> to vector<16x16xbf16>
    %86 = vector.shape_cast %85 : vector<16x16xbf16> to vector<2x8x16xbf16>
    %cst_26 = arith.constant dense<0.000000e+00> : vector<2x8x8xf32>
    %87 = tpu.matmul %82, %84, %cst_26 {dimension_numbers = #tpu.dot_dimension_numbers<[2], [2], [1], [1], [0, 0, 0, 1, 1, 1], [0], [0]>} : vector<2x8x16xbf16>, vector<2x8x16xbf16>, vector<2x8x8xf32> -> vector<2x8x8xf32>
    %88 = arith.addf %87, %13 : vector<2x8x8xf32>
    %cst_27 = arith.constant dense<0xFF800000> : vector<2x8xf32>
    %89 = vector.multi_reduction <maximumf>, %88, %cst_27 [2] : vector<2x8x8xf32> to vector<2x8xf32>
    %90 = vector.shape_cast %89 : vector<2x8xf32> to vector<2x8x1xf32>
    %91 = vector.broadcast %90 : vector<2x8x1xf32> to vector<2x8x8xf32>
    %92 = arith.subf %88, %91 : vector<2x8x8xf32>
    %93 = math.exp %92 : vector<2x8x8xf32>
    %cst_28 = arith.constant dense<0.000000e+00> : vector<2x8xf32>
    %94 = vector.multi_reduction <add>, %93, %cst_28 [2] : vector<2x8x8xf32> to vector<2x8xf32>
    %95 = vector.shape_cast %94 : vector<2x8xf32> to vector<2x8x1xf32>
    %96 = tpu.reciprocal %95 {approx = true} : vector<2x8x1xf32> -> vector<2x8x1xf32>
    %97 = vector.broadcast %96 : vector<2x8x1xf32> to vector<2x8x8xf32>
    %98 = arith.mulf %93, %97 : vector<2x8x8xf32>
    %99 = arith.truncf %98 : vector<2x8x8xf32> to vector<2x8x8xbf16>
    %cst_29 = arith.constant dense<0.000000e+00> : vector<2x8x16xf32>
    %100 = tpu.matmul %99, %86, %cst_29 {dimension_numbers = #tpu.dot_dimension_numbers<[2], [1], [1], [2], [0, 0, 0, 1, 1, 2], [0], [0]>} : vector<2x8x8xbf16>, vector<2x8x16xbf16>, vector<2x8x16xf32> -> vector<2x8x16xf32>
    %101 = vector.extract_strided_slice %60 {offsets = [0, 32], sizes = [16, 16], strides = [1, 1]} : vector<16x192xbf16> to vector<16x16xbf16>
    %102 = vector.shape_cast %101 : vector<16x16xbf16> to vector<2x8x16xbf16>
    %103 = vector.extract_strided_slice %60 {offsets = [0, 96], sizes = [16, 16], strides = [1, 1]} : vector<16x192xbf16> to vector<16x16xbf16>
    %104 = vector.shape_cast %103 : vector<16x16xbf16> to vector<2x8x16xbf16>
    %105 = vector.extract_strided_slice %60 {offsets = [0, 160], sizes = [16, 16], strides = [1, 1]} : vector<16x192xbf16> to vector<16x16xbf16>
    %106 = vector.shape_cast %105 : vector<16x16xbf16> to vector<2x8x16xbf16>
    %cst_30 = arith.constant dense<0.000000e+00> : vector<2x8x8xf32>
    %107 = tpu.matmul %102, %104, %cst_30 {dimension_numbers = #tpu.dot_dimension_numbers<[2], [2], [1], [1], [0, 0, 0, 1, 1, 1], [0], [0]>} : vector<2x8x16xbf16>, vector<2x8x16xbf16>, vector<2x8x8xf32> -> vector<2x8x8xf32>
    %108 = arith.addf %107, %13 : vector<2x8x8xf32>
    %cst_31 = arith.constant dense<0xFF800000> : vector<2x8xf32>
    %109 = vector.multi_reduction <maximumf>, %108, %cst_31 [2] : vector<2x8x8xf32> to vector<2x8xf32>
    %110 = vector.shape_cast %109 : vector<2x8xf32> to vector<2x8x1xf32>
    %111 = vector.broadcast %110 : vector<2x8x1xf32> to vector<2x8x8xf32>
    %112 = arith.subf %108, %111 : vector<2x8x8xf32>
    %113 = math.exp %112 : vector<2x8x8xf32>
    %cst_32 = arith.constant dense<0.000000e+00> : vector<2x8xf32>
    %114 = vector.multi_reduction <add>, %113, %cst_32 [2] : vector<2x8x8xf32> to vector<2x8xf32>
    %115 = vector.shape_cast %114 : vector<2x8xf32> to vector<2x8x1xf32>
    %116 = tpu.reciprocal %115 {approx = true} : vector<2x8x1xf32> -> vector<2x8x1xf32>
    %117 = vector.broadcast %116 : vector<2x8x1xf32> to vector<2x8x8xf32>
    %118 = arith.mulf %113, %117 : vector<2x8x8xf32>
    %119 = arith.truncf %118 : vector<2x8x8xf32> to vector<2x8x8xbf16>
    %cst_33 = arith.constant dense<0.000000e+00> : vector<2x8x16xf32>
    %120 = tpu.matmul %119, %106, %cst_33 {dimension_numbers = #tpu.dot_dimension_numbers<[2], [1], [1], [2], [0, 0, 0, 1, 1, 2], [0], [0]>} : vector<2x8x8xbf16>, vector<2x8x16xbf16>, vector<2x8x16xf32> -> vector<2x8x16xf32>
    %121 = vector.extract_strided_slice %60 {offsets = [0, 48], sizes = [16, 16], strides = [1, 1]} : vector<16x192xbf16> to vector<16x16xbf16>
    %122 = vector.shape_cast %121 : vector<16x16xbf16> to vector<2x8x16xbf16>
    %123 = vector.extract_strided_slice %60 {offsets = [0, 112], sizes = [16, 16], strides = [1, 1]} : vector<16x192xbf16> to vector<16x16xbf16>
    %124 = vector.shape_cast %123 : vector<16x16xbf16> to vector<2x8x16xbf16>
    %125 = vector.extract_strided_slice %60 {offsets = [0, 176], sizes = [16, 16], strides = [1, 1]} : vector<16x192xbf16> to vector<16x16xbf16>
    %126 = vector.shape_cast %125 : vector<16x16xbf16> to vector<2x8x16xbf16>
    %cst_34 = arith.constant dense<0.000000e+00> : vector<2x8x8xf32>
    %127 = tpu.matmul %122, %124, %cst_34 {dimension_numbers = #tpu.dot_dimension_numbers<[2], [2], [1], [1], [0, 0, 0, 1, 1, 1], [0], [0]>} : vector<2x8x16xbf16>, vector<2x8x16xbf16>, vector<2x8x8xf32> -> vector<2x8x8xf32>
    %128 = arith.addf %127, %13 : vector<2x8x8xf32>
    %cst_35 = arith.constant dense<0xFF800000> : vector<2x8xf32>
    %129 = vector.multi_reduction <maximumf>, %128, %cst_35 [2] : vector<2x8x8xf32> to vector<2x8xf32>
    %130 = vector.shape_cast %129 : vector<2x8xf32> to vector<2x8x1xf32>
    %131 = vector.broadcast %130 : vector<2x8x1xf32> to vector<2x8x8xf32>
    %132 = arith.subf %128, %131 : vector<2x8x8xf32>
    %133 = math.exp %132 : vector<2x8x8xf32>
    %cst_36 = arith.constant dense<0.000000e+00> : vector<2x8xf32>
    %134 = vector.multi_reduction <add>, %133, %cst_36 [2] : vector<2x8x8xf32> to vector<2x8xf32>
    %135 = vector.shape_cast %134 : vector<2x8xf32> to vector<2x8x1xf32>
    %136 = tpu.reciprocal %135 {approx = true} : vector<2x8x1xf32> -> vector<2x8x1xf32>
    %137 = vector.broadcast %136 : vector<2x8x1xf32> to vector<2x8x8xf32>
    %138 = arith.mulf %133, %137 : vector<2x8x8xf32>
    %139 = arith.truncf %138 : vector<2x8x8xf32> to vector<2x8x8xbf16>
    %cst_37 = arith.constant dense<0.000000e+00> : vector<2x8x16xf32>
    %140 = tpu.matmul %139, %126, %cst_37 {dimension_numbers = #tpu.dot_dimension_numbers<[2], [1], [1], [2], [0, 0, 0, 1, 1, 2], [0], [0]>} : vector<2x8x8xbf16>, vector<2x8x16xbf16>, vector<2x8x16xf32> -> vector<2x8x16xf32>
    %141 = tpu.concatenate %80, %100, %120, %140 in 2 : vector<2x8x16xf32>, vector<2x8x16xf32>, vector<2x8x16xf32>, vector<2x8x16xf32> -> vector<2x8x64xf32>
    %142 = vector.shape_cast %141 : vector<2x8x64xf32> to vector<16x64xf32>
    %143 = arith.truncf %142 : vector<16x64xf32> to vector<16x64xbf16>
    %c0_38 = arith.constant 0 : index
    %c0_39 = arith.constant 0 : index
    %c0_40 = arith.constant 0 : index
    %144 = vector.load %arg5[%c0_38, %c0_39, %c0_40] : memref<2x64x64xbf16, #tpu.memory_space<vmem>>, vector<1x64x64xbf16>
    %145 = vector.shape_cast %144 : vector<1x64x64xbf16> to vector<64x64xbf16>
    %cst_41 = arith.constant dense<0.000000e+00> : vector<16x64xf32>
    %146 = tpu.matmul %143, %145, %cst_41 {dimension_numbers = #tpu.dot_dimension_numbers<[1], [0], [0], [1], [0, 0, 1, 1], [], []>} : vector<16x64xbf16>, vector<64x64xbf16>, vector<16x64xf32> -> vector<16x64xf32>
    %147 = vector.broadcast %25 : vector<1x64xf32> to vector<16x64xf32>
    %148 = arith.addf %146, %147 : vector<16x64xf32>
    %149 = arith.addf %1, %148 : vector<16x64xf32>
    %cst_42 = arith.constant dense<0.000000e+00> : vector<16xf32>
    %150 = vector.multi_reduction <add>, %149, %cst_42 [1] : vector<16x64xf32> to vector<16xf32>
    %151 = vector.shape_cast %150 : vector<16xf32> to vector<16x1xf32>
    %cst_43 = arith.constant 6.400000e+01 : f32
    %152 = vector.broadcast %cst_43 : f32 to vector<16x1xf32>
    %153 = arith.divf %151, %152 : vector<16x1xf32>
    %154 = vector.broadcast %153 : vector<16x1xf32> to vector<16x64xf32>
    %155 = arith.subf %149, %154 : vector<16x64xf32>
    %156 = arith.mulf %155, %155 : vector<16x64xf32>
    %cst_44 = arith.constant dense<0.000000e+00> : vector<16xf32>
    %157 = vector.multi_reduction <add>, %156, %cst_44 [1] : vector<16x64xf32> to vector<16xf32>
    %158 = vector.shape_cast %157 : vector<16xf32> to vector<16x1xf32>
    %cst_45 = arith.constant 6.400000e+01 : f32
    %159 = vector.broadcast %cst_45 : f32 to vector<16x1xf32>
    %160 = arith.divf %158, %159 : vector<16x1xf32>
    %161 = vector.broadcast %153 : vector<16x1xf32> to vector<16x64xf32>
    %162 = arith.subf %149, %161 : vector<16x64xf32>
    %cst_46 = arith.constant 9.99999974E-6 : f32
    %163 = vector.broadcast %cst_46 : f32 to vector<16x1xf32>
    %164 = arith.addf %160, %163 : vector<16x1xf32>
    %165 = math.rsqrt %164 : vector<16x1xf32>
    %166 = vector.broadcast %165 : vector<16x1xf32> to vector<16x64xf32>
    %167 = arith.mulf %162, %166 : vector<16x64xf32>
    %168 = vector.broadcast %21 : vector<1x64xf32> to vector<16x64xf32>
    %169 = arith.mulf %167, %168 : vector<16x64xf32>
    %170 = vector.broadcast %23 : vector<1x64xf32> to vector<16x64xf32>
    %171 = arith.addf %169, %170 : vector<16x64xf32>
    %172 = arith.truncf %171 : vector<16x64xf32> to vector<16x64xbf16>
    %c0_47 = arith.constant 0 : index
    %c0_48 = arith.constant 0 : index
    %c0_49 = arith.constant 0 : index
    %173 = vector.load %arg6[%c0_47, %c0_48, %c0_49] : memref<2x64x128xbf16, #tpu.memory_space<vmem>>, vector<1x64x128xbf16>
    %174 = vector.shape_cast %173 : vector<1x64x128xbf16> to vector<64x128xbf16>
    %cst_50 = arith.constant dense<0.000000e+00> : vector<16x128xf32>
    %175 = tpu.matmul %172, %174, %cst_50 {dimension_numbers = #tpu.dot_dimension_numbers<[1], [0], [0], [1], [0, 0, 1, 1], [], []>} : vector<16x64xbf16>, vector<64x128xbf16>, vector<16x128xf32> -> vector<16x128xf32>
    %176 = vector.broadcast %29 : vector<1x128xf32> to vector<16x128xf32>
    %177 = arith.addf %175, %176 : vector<16x128xf32>
    %cst_51 = arith.constant 1.702000e+00 : f32
    %178 = vector.broadcast %cst_51 : f32 to vector<16x128xf32>
    %179 = arith.mulf %178, %177 : vector<16x128xf32>
    %180 = arith.negf %179 : vector<16x128xf32>
    %181 = math.exp %180 : vector<16x128xf32>
    %cst_52 = arith.constant 1.000000e+00 : f32
    %182 = vector.broadcast %cst_52 : f32 to vector<16x128xf32>
    %183 = arith.addf %182, %181 : vector<16x128xf32>
    %184 = arith.divf %182, %183 : vector<16x128xf32>
    %185 = arith.mulf %177, %184 : vector<16x128xf32>
    %186 = arith.truncf %185 : vector<16x128xf32> to vector<16x128xbf16>
    %c0_53 = arith.constant 0 : index
    %c0_54 = arith.constant 0 : index
    %c0_55 = arith.constant 0 : index
    %187 = vector.load %arg7[%c0_53, %c0_54, %c0_55] : memref<2x128x64xbf16, #tpu.memory_space<vmem>>, vector<1x128x64xbf16>
    %188 = vector.shape_cast %187 : vector<1x128x64xbf16> to vector<128x64xbf16>
    %cst_56 = arith.constant dense<0.000000e+00> : vector<16x64xf32>
    %189 = tpu.matmul %186, %188, %cst_56 {dimension_numbers = #tpu.dot_dimension_numbers<[1], [0], [0], [1], [0, 0, 1, 1], [], []>} : vector<16x128xbf16>, vector<128x64xbf16>, vector<16x64xf32> -> vector<16x64xf32>
    %190 = vector.broadcast %27 : vector<1x64xf32> to vector<16x64xf32>
    %191 = arith.addf %189, %190 : vector<16x64xf32>
    %192 = arith.addf %149, %191 : vector<16x64xf32>
    %193 = vector.extract_strided_slice %14 {offsets = [1, 0, 0], sizes = [1, 1, 64], strides = [1, 1, 1]} : vector<2x8x128xf32> to vector<1x1x64xf32>
    %194 = vector.shape_cast %193 : vector<1x1x64xf32> to vector<1x64xf32>
    %195 = vector.extract_strided_slice %14 {offsets = [1, 1, 0], sizes = [1, 1, 64], strides = [1, 1, 1]} : vector<2x8x128xf32> to vector<1x1x64xf32>
    %196 = vector.shape_cast %195 : vector<1x1x64xf32> to vector<1x64xf32>
    %197 = vector.extract_strided_slice %14 {offsets = [1, 2, 0], sizes = [1, 1, 64], strides = [1, 1, 1]} : vector<2x8x128xf32> to vector<1x1x64xf32>
    %198 = vector.shape_cast %197 : vector<1x1x64xf32> to vector<1x64xf32>
    %199 = vector.extract_strided_slice %14 {offsets = [1, 3, 0], sizes = [1, 1, 64], strides = [1, 1, 1]} : vector<2x8x128xf32> to vector<1x1x64xf32>
    %200 = vector.shape_cast %199 : vector<1x1x64xf32> to vector<1x64xf32>
    %201 = vector.extract_strided_slice %14 {offsets = [1, 4, 0], sizes = [1, 1, 64], strides = [1, 1, 1]} : vector<2x8x128xf32> to vector<1x1x64xf32>
    %202 = vector.shape_cast %201 : vector<1x1x64xf32> to vector<1x64xf32>
    %203 = vector.extract_strided_slice %14 {offsets = [1, 5, 0], sizes = [1, 1, 64], strides = [1, 1, 1]} : vector<2x8x128xf32> to vector<1x1x64xf32>
    %204 = vector.shape_cast %203 : vector<1x1x64xf32> to vector<1x64xf32>
    %205 = vector.extract_strided_slice %14 {offsets = [1, 6, 0], sizes = [1, 1, 128], strides = [1, 1, 1]} : vector<2x8x128xf32> to vector<1x1x128xf32>
    %206 = vector.shape_cast %205 : vector<1x1x128xf32> to vector<1x128xf32>
    %cst_57 = arith.constant dense<0.000000e+00> : vector<16xf32>
    %207 = vector.multi_reduction <add>, %192, %cst_57 [1] : vector<16x64xf32> to vector<16xf32>
    %208 = vector.shape_cast %207 : vector<16xf32> to vector<16x1xf32>
    %cst_58 = arith.constant 6.400000e+01 : f32
    %209 = vector.broadcast %cst_58 : f32 to vector<16x1xf32>
    %210 = arith.divf %208, %209 : vector<16x1xf32>
    %211 = vector.broadcast %210 : vector<16x1xf32> to vector<16x64xf32>
    %212 = arith.subf %192, %211 : vector<16x64xf32>
    %213 = arith.mulf %212, %212 : vector<16x64xf32>
    %cst_59 = arith.constant dense<0.000000e+00> : vector<16xf32>
    %214 = vector.multi_reduction <add>, %213, %cst_59 [1] : vector<16x64xf32> to vector<16xf32>
    %215 = vector.shape_cast %214 : vector<16xf32> to vector<16x1xf32>
    %cst_60 = arith.constant 6.400000e+01 : f32
    %216 = vector.broadcast %cst_60 : f32 to vector<16x1xf32>
    %217 = arith.divf %215, %216 : vector<16x1xf32>
    %218 = vector.broadcast %210 : vector<16x1xf32> to vector<16x64xf32>
    %219 = arith.subf %192, %218 : vector<16x64xf32>
    %cst_61 = arith.constant 9.99999974E-6 : f32
    %220 = vector.broadcast %cst_61 : f32 to vector<16x1xf32>
    %221 = arith.addf %217, %220 : vector<16x1xf32>
    %222 = math.rsqrt %221 : vector<16x1xf32>
    %223 = vector.broadcast %222 : vector<16x1xf32> to vector<16x64xf32>
    %224 = arith.mulf %219, %223 : vector<16x64xf32>
    %225 = vector.broadcast %194 : vector<1x64xf32> to vector<16x64xf32>
    %226 = arith.mulf %224, %225 : vector<16x64xf32>
    %227 = vector.broadcast %196 : vector<1x64xf32> to vector<16x64xf32>
    %228 = arith.addf %226, %227 : vector<16x64xf32>
    %229 = arith.truncf %228 : vector<16x64xf32> to vector<16x64xbf16>
    %c1 = arith.constant 1 : index
    %c0_62 = arith.constant 0 : index
    %c0_63 = arith.constant 0 : index
    %230 = vector.load %arg3[%c1, %c0_62, %c0_63] : memref<2x64x192xbf16, #tpu.memory_space<vmem>>, vector<1x64x192xbf16>
    %231 = vector.shape_cast %230 : vector<1x64x192xbf16> to vector<64x192xbf16>
    %cst_64 = arith.constant dense<0.000000e+00> : vector<16x192xf32>
    %232 = tpu.matmul %229, %231, %cst_64 {dimension_numbers = #tpu.dot_dimension_numbers<[1], [0], [0], [1], [0, 0, 1, 1], [], []>} : vector<16x64xbf16>, vector<64x192xbf16>, vector<16x192xf32> -> vector<16x192xf32>
    %c1_65 = arith.constant 1 : index
    %c0_66 = arith.constant 0 : index
    %c0_67 = arith.constant 0 : index
    %233 = vector.load %arg4[%c1_65, %c0_66, %c0_67] : memref<2x1x192xf32, #tpu.memory_space<vmem>>, vector<1x1x192xf32>
    %234 = vector.shape_cast %233 : vector<1x1x192xf32> to vector<1x192xf32>
    %235 = vector.broadcast %234 : vector<1x192xf32> to vector<16x192xf32>
    %236 = arith.addf %232, %235 : vector<16x192xf32>
    %237 = arith.truncf %236 : vector<16x192xf32> to vector<16x192xbf16>
    %238 = vector.extract_strided_slice %237 {offsets = [0, 0], sizes = [16, 16], strides = [1, 1]} : vector<16x192xbf16> to vector<16x16xbf16>
    %239 = vector.shape_cast %238 : vector<16x16xbf16> to vector<2x8x16xbf16>
    %240 = vector.extract_strided_slice %237 {offsets = [0, 64], sizes = [16, 16], strides = [1, 1]} : vector<16x192xbf16> to vector<16x16xbf16>
    %241 = vector.shape_cast %240 : vector<16x16xbf16> to vector<2x8x16xbf16>
    %242 = vector.extract_strided_slice %237 {offsets = [0, 128], sizes = [16, 16], strides = [1, 1]} : vector<16x192xbf16> to vector<16x16xbf16>
    %243 = vector.shape_cast %242 : vector<16x16xbf16> to vector<2x8x16xbf16>
    %cst_68 = arith.constant dense<0.000000e+00> : vector<2x8x8xf32>
    %244 = tpu.matmul %239, %241, %cst_68 {dimension_numbers = #tpu.dot_dimension_numbers<[2], [2], [1], [1], [0, 0, 0, 1, 1, 1], [0], [0]>} : vector<2x8x16xbf16>, vector<2x8x16xbf16>, vector<2x8x8xf32> -> vector<2x8x8xf32>
    %245 = arith.addf %244, %13 : vector<2x8x8xf32>
    %cst_69 = arith.constant dense<0xFF800000> : vector<2x8xf32>
    %246 = vector.multi_reduction <maximumf>, %245, %cst_69 [2] : vector<2x8x8xf32> to vector<2x8xf32>
    %247 = vector.shape_cast %246 : vector<2x8xf32> to vector<2x8x1xf32>
    %248 = vector.broadcast %247 : vector<2x8x1xf32> to vector<2x8x8xf32>
    %249 = arith.subf %245, %248 : vector<2x8x8xf32>
    %250 = math.exp %249 : vector<2x8x8xf32>
    %cst_70 = arith.constant dense<0.000000e+00> : vector<2x8xf32>
    %251 = vector.multi_reduction <add>, %250, %cst_70 [2] : vector<2x8x8xf32> to vector<2x8xf32>
    %252 = vector.shape_cast %251 : vector<2x8xf32> to vector<2x8x1xf32>
    %253 = tpu.reciprocal %252 {approx = true} : vector<2x8x1xf32> -> vector<2x8x1xf32>
    %254 = vector.broadcast %253 : vector<2x8x1xf32> to vector<2x8x8xf32>
    %255 = arith.mulf %250, %254 : vector<2x8x8xf32>
    %256 = arith.truncf %255 : vector<2x8x8xf32> to vector<2x8x8xbf16>
    %cst_71 = arith.constant dense<0.000000e+00> : vector<2x8x16xf32>
    %257 = tpu.matmul %256, %243, %cst_71 {dimension_numbers = #tpu.dot_dimension_numbers<[2], [1], [1], [2], [0, 0, 0, 1, 1, 2], [0], [0]>} : vector<2x8x8xbf16>, vector<2x8x16xbf16>, vector<2x8x16xf32> -> vector<2x8x16xf32>
    %258 = vector.extract_strided_slice %237 {offsets = [0, 16], sizes = [16, 16], strides = [1, 1]} : vector<16x192xbf16> to vector<16x16xbf16>
    %259 = vector.shape_cast %258 : vector<16x16xbf16> to vector<2x8x16xbf16>
    %260 = vector.extract_strided_slice %237 {offsets = [0, 80], sizes = [16, 16], strides = [1, 1]} : vector<16x192xbf16> to vector<16x16xbf16>
    %261 = vector.shape_cast %260 : vector<16x16xbf16> to vector<2x8x16xbf16>
    %262 = vector.extract_strided_slice %237 {offsets = [0, 144], sizes = [16, 16], strides = [1, 1]} : vector<16x192xbf16> to vector<16x16xbf16>
    %263 = vector.shape_cast %262 : vector<16x16xbf16> to vector<2x8x16xbf16>
    %cst_72 = arith.constant dense<0.000000e+00> : vector<2x8x8xf32>
    %264 = tpu.matmul %259, %261, %cst_72 {dimension_numbers = #tpu.dot_dimension_numbers<[2], [2], [1], [1], [0, 0, 0, 1, 1, 1], [0], [0]>} : vector<2x8x16xbf16>, vector<2x8x16xbf16>, vector<2x8x8xf32> -> vector<2x8x8xf32>
    %265 = arith.addf %264, %13 : vector<2x8x8xf32>
    %cst_73 = arith.constant dense<0xFF800000> : vector<2x8xf32>
    %266 = vector.multi_reduction <maximumf>, %265, %cst_73 [2] : vector<2x8x8xf32> to vector<2x8xf32>
    %267 = vector.shape_cast %266 : vector<2x8xf32> to vector<2x8x1xf32>
    %268 = vector.broadcast %267 : vector<2x8x1xf32> to vector<2x8x8xf32>
    %269 = arith.subf %265, %268 : vector<2x8x8xf32>
    %270 = math.exp %269 : vector<2x8x8xf32>
    %cst_74 = arith.constant dense<0.000000e+00> : vector<2x8xf32>
    %271 = vector.multi_reduction <add>, %270, %cst_74 [2] : vector<2x8x8xf32> to vector<2x8xf32>
    %272 = vector.shape_cast %271 : vector<2x8xf32> to vector<2x8x1xf32>
    %273 = tpu.reciprocal %272 {approx = true} : vector<2x8x1xf32> -> vector<2x8x1xf32>
    %274 = vector.broadcast %273 : vector<2x8x1xf32> to vector<2x8x8xf32>
    %275 = arith.mulf %270, %274 : vector<2x8x8xf32>
    %276 = arith.truncf %275 : vector<2x8x8xf32> to vector<2x8x8xbf16>
    %cst_75 = arith.constant dense<0.000000e+00> : vector<2x8x16xf32>
    %277 = tpu.matmul %276, %263, %cst_75 {dimension_numbers = #tpu.dot_dimension_numbers<[2], [1], [1], [2], [0, 0, 0, 1, 1, 2], [0], [0]>} : vector<2x8x8xbf16>, vector<2x8x16xbf16>, vector<2x8x16xf32> -> vector<2x8x16xf32>
    %278 = vector.extract_strided_slice %237 {offsets = [0, 32], sizes = [16, 16], strides = [1, 1]} : vector<16x192xbf16> to vector<16x16xbf16>
    %279 = vector.shape_cast %278 : vector<16x16xbf16> to vector<2x8x16xbf16>
    %280 = vector.extract_strided_slice %237 {offsets = [0, 96], sizes = [16, 16], strides = [1, 1]} : vector<16x192xbf16> to vector<16x16xbf16>
    %281 = vector.shape_cast %280 : vector<16x16xbf16> to vector<2x8x16xbf16>
    %282 = vector.extract_strided_slice %237 {offsets = [0, 160], sizes = [16, 16], strides = [1, 1]} : vector<16x192xbf16> to vector<16x16xbf16>
    %283 = vector.shape_cast %282 : vector<16x16xbf16> to vector<2x8x16xbf16>
    %cst_76 = arith.constant dense<0.000000e+00> : vector<2x8x8xf32>
    %284 = tpu.matmul %279, %281, %cst_76 {dimension_numbers = #tpu.dot_dimension_numbers<[2], [2], [1], [1], [0, 0, 0, 1, 1, 1], [0], [0]>} : vector<2x8x16xbf16>, vector<2x8x16xbf16>, vector<2x8x8xf32> -> vector<2x8x8xf32>
    %285 = arith.addf %284, %13 : vector<2x8x8xf32>
    %cst_77 = arith.constant dense<0xFF800000> : vector<2x8xf32>
    %286 = vector.multi_reduction <maximumf>, %285, %cst_77 [2] : vector<2x8x8xf32> to vector<2x8xf32>
    %287 = vector.shape_cast %286 : vector<2x8xf32> to vector<2x8x1xf32>
    %288 = vector.broadcast %287 : vector<2x8x1xf32> to vector<2x8x8xf32>
    %289 = arith.subf %285, %288 : vector<2x8x8xf32>
    %290 = math.exp %289 : vector<2x8x8xf32>
    %cst_78 = arith.constant dense<0.000000e+00> : vector<2x8xf32>
    %291 = vector.multi_reduction <add>, %290, %cst_78 [2] : vector<2x8x8xf32> to vector<2x8xf32>
    %292 = vector.shape_cast %291 : vector<2x8xf32> to vector<2x8x1xf32>
    %293 = tpu.reciprocal %292 {approx = true} : vector<2x8x1xf32> -> vector<2x8x1xf32>
    %294 = vector.broadcast %293 : vector<2x8x1xf32> to vector<2x8x8xf32>
    %295 = arith.mulf %290, %294 : vector<2x8x8xf32>
    %296 = arith.truncf %295 : vector<2x8x8xf32> to vector<2x8x8xbf16>
    %cst_79 = arith.constant dense<0.000000e+00> : vector<2x8x16xf32>
    %297 = tpu.matmul %296, %283, %cst_79 {dimension_numbers = #tpu.dot_dimension_numbers<[2], [1], [1], [2], [0, 0, 0, 1, 1, 2], [0], [0]>} : vector<2x8x8xbf16>, vector<2x8x16xbf16>, vector<2x8x16xf32> -> vector<2x8x16xf32>
    %298 = vector.extract_strided_slice %237 {offsets = [0, 48], sizes = [16, 16], strides = [1, 1]} : vector<16x192xbf16> to vector<16x16xbf16>
    %299 = vector.shape_cast %298 : vector<16x16xbf16> to vector<2x8x16xbf16>
    %300 = vector.extract_strided_slice %237 {offsets = [0, 112], sizes = [16, 16], strides = [1, 1]} : vector<16x192xbf16> to vector<16x16xbf16>
    %301 = vector.shape_cast %300 : vector<16x16xbf16> to vector<2x8x16xbf16>
    %302 = vector.extract_strided_slice %237 {offsets = [0, 176], sizes = [16, 16], strides = [1, 1]} : vector<16x192xbf16> to vector<16x16xbf16>
    %303 = vector.shape_cast %302 : vector<16x16xbf16> to vector<2x8x16xbf16>
    %cst_80 = arith.constant dense<0.000000e+00> : vector<2x8x8xf32>
    %304 = tpu.matmul %299, %301, %cst_80 {dimension_numbers = #tpu.dot_dimension_numbers<[2], [2], [1], [1], [0, 0, 0, 1, 1, 1], [0], [0]>} : vector<2x8x16xbf16>, vector<2x8x16xbf16>, vector<2x8x8xf32> -> vector<2x8x8xf32>
    %305 = arith.addf %304, %13 : vector<2x8x8xf32>
    %cst_81 = arith.constant dense<0xFF800000> : vector<2x8xf32>
    %306 = vector.multi_reduction <maximumf>, %305, %cst_81 [2] : vector<2x8x8xf32> to vector<2x8xf32>
    %307 = vector.shape_cast %306 : vector<2x8xf32> to vector<2x8x1xf32>
    %308 = vector.broadcast %307 : vector<2x8x1xf32> to vector<2x8x8xf32>
    %309 = arith.subf %305, %308 : vector<2x8x8xf32>
    %310 = math.exp %309 : vector<2x8x8xf32>
    %cst_82 = arith.constant dense<0.000000e+00> : vector<2x8xf32>
    %311 = vector.multi_reduction <add>, %310, %cst_82 [2] : vector<2x8x8xf32> to vector<2x8xf32>
    %312 = vector.shape_cast %311 : vector<2x8xf32> to vector<2x8x1xf32>
    %313 = tpu.reciprocal %312 {approx = true} : vector<2x8x1xf32> -> vector<2x8x1xf32>
    %314 = vector.broadcast %313 : vector<2x8x1xf32> to vector<2x8x8xf32>
    %315 = arith.mulf %310, %314 : vector<2x8x8xf32>
    %316 = arith.truncf %315 : vector<2x8x8xf32> to vector<2x8x8xbf16>
    %cst_83 = arith.constant dense<0.000000e+00> : vector<2x8x16xf32>
    %317 = tpu.matmul %316, %303, %cst_83 {dimension_numbers = #tpu.dot_dimension_numbers<[2], [1], [1], [2], [0, 0, 0, 1, 1, 2], [0], [0]>} : vector<2x8x8xbf16>, vector<2x8x16xbf16>, vector<2x8x16xf32> -> vector<2x8x16xf32>
    %318 = tpu.concatenate %257, %277, %297, %317 in 2 : vector<2x8x16xf32>, vector<2x8x16xf32>, vector<2x8x16xf32>, vector<2x8x16xf32> -> vector<2x8x64xf32>
    %319 = vector.shape_cast %318 : vector<2x8x64xf32> to vector<16x64xf32>
    %320 = arith.truncf %319 : vector<16x64xf32> to vector<16x64xbf16>
    %c1_84 = arith.constant 1 : index
    %c0_85 = arith.constant 0 : index
    %c0_86 = arith.constant 0 : index
    %321 = vector.load %arg5[%c1_84, %c0_85, %c0_86] : memref<2x64x64xbf16, #tpu.memory_space<vmem>>, vector<1x64x64xbf16>
    %322 = vector.shape_cast %321 : vector<1x64x64xbf16> to vector<64x64xbf16>
    %cst_87 = arith.constant dense<0.000000e+00> : vector<16x64xf32>
    %323 = tpu.matmul %320, %322, %cst_87 {dimension_numbers = #tpu.dot_dimension_numbers<[1], [0], [0], [1], [0, 0, 1, 1], [], []>} : vector<16x64xbf16>, vector<64x64xbf16>, vector<16x64xf32> -> vector<16x64xf32>
    %324 = vector.broadcast %202 : vector<1x64xf32> to vector<16x64xf32>
    %325 = arith.addf %323, %324 : vector<16x64xf32>
    %326 = arith.addf %192, %325 : vector<16x64xf32>
    %cst_88 = arith.constant dense<0.000000e+00> : vector<16xf32>
    %327 = vector.multi_reduction <add>, %326, %cst_88 [1] : vector<16x64xf32> to vector<16xf32>
    %328 = vector.shape_cast %327 : vector<16xf32> to vector<16x1xf32>
    %cst_89 = arith.constant 6.400000e+01 : f32
    %329 = vector.broadcast %cst_89 : f32 to vector<16x1xf32>
    %330 = arith.divf %328, %329 : vector<16x1xf32>
    %331 = vector.broadcast %330 : vector<16x1xf32> to vector<16x64xf32>
    %332 = arith.subf %326, %331 : vector<16x64xf32>
    %333 = arith.mulf %332, %332 : vector<16x64xf32>
    %cst_90 = arith.constant dense<0.000000e+00> : vector<16xf32>
    %334 = vector.multi_reduction <add>, %333, %cst_90 [1] : vector<16x64xf32> to vector<16xf32>
    %335 = vector.shape_cast %334 : vector<16xf32> to vector<16x1xf32>
    %cst_91 = arith.constant 6.400000e+01 : f32
    %336 = vector.broadcast %cst_91 : f32 to vector<16x1xf32>
    %337 = arith.divf %335, %336 : vector<16x1xf32>
    %338 = vector.broadcast %330 : vector<16x1xf32> to vector<16x64xf32>
    %339 = arith.subf %326, %338 : vector<16x64xf32>
    %cst_92 = arith.constant 9.99999974E-6 : f32
    %340 = vector.broadcast %cst_92 : f32 to vector<16x1xf32>
    %341 = arith.addf %337, %340 : vector<16x1xf32>
    %342 = math.rsqrt %341 : vector<16x1xf32>
    %343 = vector.broadcast %342 : vector<16x1xf32> to vector<16x64xf32>
    %344 = arith.mulf %339, %343 : vector<16x64xf32>
    %345 = vector.broadcast %198 : vector<1x64xf32> to vector<16x64xf32>
    %346 = arith.mulf %344, %345 : vector<16x64xf32>
    %347 = vector.broadcast %200 : vector<1x64xf32> to vector<16x64xf32>
    %348 = arith.addf %346, %347 : vector<16x64xf32>
    %349 = arith.truncf %348 : vector<16x64xf32> to vector<16x64xbf16>
    %c1_93 = arith.constant 1 : index
    %c0_94 = arith.constant 0 : index
    %c0_95 = arith.constant 0 : index
    %350 = vector.load %arg6[%c1_93, %c0_94, %c0_95] : memref<2x64x128xbf16, #tpu.memory_space<vmem>>, vector<1x64x128xbf16>
    %351 = vector.shape_cast %350 : vector<1x64x128xbf16> to vector<64x128xbf16>
    %cst_96 = arith.constant dense<0.000000e+00> : vector<16x128xf32>
    %352 = tpu.matmul %349, %351, %cst_96 {dimension_numbers = #tpu.dot_dimension_numbers<[1], [0], [0], [1], [0, 0, 1, 1], [], []>} : vector<16x64xbf16>, vector<64x128xbf16>, vector<16x128xf32> -> vector<16x128xf32>
    %353 = vector.broadcast %206 : vector<1x128xf32> to vector<16x128xf32>
    %354 = arith.addf %352, %353 : vector<16x128xf32>
    %cst_97 = arith.constant 1.702000e+00 : f32
    %355 = vector.broadcast %cst_97 : f32 to vector<16x128xf32>
    %356 = arith.mulf %355, %354 : vector<16x128xf32>
    %357 = arith.negf %356 : vector<16x128xf32>
    %358 = math.exp %357 : vector<16x128xf32>
    %cst_98 = arith.constant 1.000000e+00 : f32
    %359 = vector.broadcast %cst_98 : f32 to vector<16x128xf32>
    %360 = arith.addf %359, %358 : vector<16x128xf32>
    %361 = arith.divf %359, %360 : vector<16x128xf32>
    %362 = arith.mulf %354, %361 : vector<16x128xf32>
    %363 = arith.truncf %362 : vector<16x128xf32> to vector<16x128xbf16>
    %c1_99 = arith.constant 1 : index
    %c0_100 = arith.constant 0 : index
    %c0_101 = arith.constant 0 : index
    %364 = vector.load %arg7[%c1_99, %c0_100, %c0_101] : memref<2x128x64xbf16, #tpu.memory_space<vmem>>, vector<1x128x64xbf16>
    %365 = vector.shape_cast %364 : vector<1x128x64xbf16> to vector<128x64xbf16>
    %cst_102 = arith.constant dense<0.000000e+00> : vector<16x64xf32>
    %366 = tpu.matmul %363, %365, %cst_102 {dimension_numbers = #tpu.dot_dimension_numbers<[1], [0], [0], [1], [0, 0, 1, 1], [], []>} : vector<16x128xbf16>, vector<128x64xbf16>, vector<16x64xf32> -> vector<16x64xf32>
    %367 = vector.broadcast %204 : vector<1x64xf32> to vector<16x64xf32>
    %368 = arith.addf %366, %367 : vector<16x64xf32>
    %369 = arith.addf %326, %368 : vector<16x64xf32>
    %370 = vector.extract_strided_slice %15 {offsets = [0, 0], sizes = [1, 64], strides = [1, 1]} : vector<2x64xf32> to vector<1x64xf32>
    %371 = vector.extract_strided_slice %15 {offsets = [1, 0], sizes = [1, 64], strides = [1, 1]} : vector<2x64xf32> to vector<1x64xf32>
    %cst_103 = arith.constant dense<0.000000e+00> : vector<16xf32>
    %372 = vector.multi_reduction <add>, %369, %cst_103 [1] : vector<16x64xf32> to vector<16xf32>
    %373 = vector.shape_cast %372 : vector<16xf32> to vector<16x1xf32>
    %cst_104 = arith.constant 6.400000e+01 : f32
    %374 = vector.broadcast %cst_104 : f32 to vector<16x1xf32>
    %375 = arith.divf %373, %374 : vector<16x1xf32>
    %376 = vector.broadcast %375 : vector<16x1xf32> to vector<16x64xf32>
    %377 = arith.subf %369, %376 : vector<16x64xf32>
    %378 = arith.mulf %377, %377 : vector<16x64xf32>
    %cst_105 = arith.constant dense<0.000000e+00> : vector<16xf32>
    %379 = vector.multi_reduction <add>, %378, %cst_105 [1] : vector<16x64xf32> to vector<16xf32>
    %380 = vector.shape_cast %379 : vector<16xf32> to vector<16x1xf32>
    %cst_106 = arith.constant 6.400000e+01 : f32
    %381 = vector.broadcast %cst_106 : f32 to vector<16x1xf32>
    %382 = arith.divf %380, %381 : vector<16x1xf32>
    %383 = vector.broadcast %375 : vector<16x1xf32> to vector<16x64xf32>
    %384 = arith.subf %369, %383 : vector<16x64xf32>
    %cst_107 = arith.constant 9.99999974E-6 : f32
    %385 = vector.broadcast %cst_107 : f32 to vector<16x1xf32>
    %386 = arith.addf %382, %385 : vector<16x1xf32>
    %387 = math.rsqrt %386 : vector<16x1xf32>
    %388 = vector.broadcast %387 : vector<16x1xf32> to vector<16x64xf32>
    %389 = arith.mulf %384, %388 : vector<16x64xf32>
    %390 = vector.broadcast %370 : vector<1x64xf32> to vector<16x64xf32>
    %391 = arith.mulf %389, %390 : vector<16x64xf32>
    %392 = vector.broadcast %371 : vector<1x64xf32> to vector<16x64xf32>
    %393 = arith.addf %391, %392 : vector<16x64xf32>
    %394 = vector.shape_cast %393 : vector<16x64xf32> to vector<2x8x64xf32>
    %c0_108 = arith.constant 0 : index
    %c0_109 = arith.constant 0 : index
    %c0_110 = arith.constant 0 : index
    %395 = vector.load %arg10[%c0_108, %c0_109, %c0_110] : memref<2x8x64xf32, #tpu.memory_space<vmem>>, vector<2x8x64xf32>
    tpu.vector_store %arg10[%c0_108, %c0_109, %c0_110], %394 {strides = array<i32>} : memref<2x8x64xf32, #tpu.memory_space<vmem>>, vector<2x8x64xf32>,
    return
  }
  func.func @transform_0(%arg0: i32) -> (i32, i32, i32) {
    %c0_i32 = arith.constant 0 : i32
    %c0_i32_0 = arith.constant 0 : i32
    %c0_i32_1 = arith.constant 0 : i32
    return %arg0, %c0_i32, %c0_i32_0 : i32, i32, i32
  }
  func.func @transform_1(%arg0: i32) -> (i32, i32) {
    %c0_i32 = arith.constant 0 : i32
    %c0_i32_0 = arith.constant 0 : i32
    return %arg0, %c0_i32 : i32, i32
  }
  func.func @transform_2(%arg0: i32) -> (i32, i32, i32) {
    %c0_i32 = arith.constant 0 : i32
    %c0_i32_0 = arith.constant 0 : i32
    %c0_i32_1 = arith.constant 0 : i32
    %c0_i32_2 = arith.constant 0 : i32
    return %c0_i32, %c0_i32_0, %c0_i32_1 : i32, i32, i32
  }
  func.func @transform_3(%arg0: i32) -> (i32, i32, i32) {
    %c0_i32 = arith.constant 0 : i32
    %c0_i32_0 = arith.constant 0 : i32
    %c0_i32_1 = arith.constant 0 : i32
    %c0_i32_2 = arith.constant 0 : i32
    return %c0_i32, %c0_i32_0, %c0_i32_1 : i32, i32, i32
  }
  func.func @transform_4(%arg0: i32) -> (i32, i32, i32) {
    %c0_i32 = arith.constant 0 : i32
    %c0_i32_0 = arith.constant 0 : i32
    %c0_i32_1 = arith.constant 0 : i32
    %c0_i32_2 = arith.constant 0 : i32
    return %c0_i32, %c0_i32_0, %c0_i32_1 : i32, i32, i32
  }
  func.func @transform_5(%arg0: i32) -> (i32, i32, i32) {
    %c0_i32 = arith.constant 0 : i32
    %c0_i32_0 = arith.constant 0 : i32
    %c0_i32_1 = arith.constant 0 : i32
    %c0_i32_2 = arith.constant 0 : i32
    return %c0_i32, %c0_i32_0, %c0_i32_1 : i32, i32, i32
  }
  func.func @transform_6(%arg0: i32) -> (i32, i32, i32) {
    %c0_i32 = arith.constant 0 : i32
    %c0_i32_0 = arith.constant 0 : i32
    %c0_i32_1 = arith.constant 0 : i32
    %c0_i32_2 = arith.constant 0 : i32
    return %c0_i32, %c0_i32_0, %c0_i32_1 : i32, i32, i32
  }
  func.func @transform_7(%arg0: i32) -> (i32, i32, i32) {
    %c0_i32 = arith.constant 0 : i32
    %c0_i32_0 = arith.constant 0 : i32
    %c0_i32_1 = arith.constant 0 : i32
    %c0_i32_2 = arith.constant 0 : i32
    return %c0_i32, %c0_i32_0, %c0_i32_1 : i32, i32, i32
  }
  func.func @transform_8(%arg0: i32) -> (i32, i32) {
    %c0_i32 = arith.constant 0 : i32
    %c0_i32_0 = arith.constant 0 : i32
    %c0_i32_1 = arith.constant 0 : i32
    return %c0_i32, %c0_i32_0 : i32, i32
  }
  func.func @transform_9(%arg0: i32) -> (i32, i32, i32) {
    %c0_i32 = arith.constant 0 : i32
    %c0_i32_0 = arith.constant 0 : i32
    %c0_i32_1 = arith.constant 0 : i32
    return %arg0, %c0_i32, %c0_i32_0 : i32, i32, i32
  }
}

</mosaic_0001>

<bundles_post_ra>
// kernel: tpu_custom_call.1
= control target key start
LH: loop header
LB: loop body
LE: loop exit
PB: predicated region body
PF: predicated region fallthrough
CT: control target
= control target key end

     0   :  { %14 = vsyncpa [#allocation3], 0  ;;  %s4582_s0 = inlined_call_operand.hbm [shape: f32[2,8,64], index: 0, kind: input, shape index: {}]   ;;  %s4583_s1 = inlined_call_operand.vmem [shape: f32[2,8], index: 1, kind: input, shape index: {}]   ;;  %s4584_s2 = inlined_call_operand.vmem [shape: bf16[2,64,192], index: 2, kind: input, shape index: {}]   ;;  %s4585_s3 = inlined_call_operand.hbm [shape: f32[2,1,192], index: 3, kind: input, shape index: {}]   ;;  %s4586_s4 = inlined_call_operand.vmem [shape: bf16[2,64,64], index: 4, kind: input, shape index: {}]   ;;  %s4587_s5 = inlined_call_operand.hbm [shape: bf16[2,64,128], index: 5, kind: input, shape index: {}]   ;;  %s4588_s6 = inlined_call_operand.vmem [shape: bf16[2,128,64], index: 6, kind: input, shape index: {}]   ;;  %s4589_s7 = inlined_call_operand.hbm [shape: f32[2,8,128], index: 7, kind: input, shape index: {}]   ;;  %s4590_s8 = inlined_call_operand.vmem [shape: f32[2,64], index: 8, kind: input, shape index: {}]   ;;  %s4591_s9 = inlined_call_operand.hbm [shape: f32[2,8,64], index: 9, kind: output, shape index: {}]  }
   0x1   :  { %15 = vsyncpa [#allocation6], 0 }
   0x2   :  { %16 = vsyncpa [#allocation9], 0 }
   0x3   :  { %17 = vsyncpa [#allocation4], 0  ;;  %s3823_s30 = smov [#allocation5]  }
   0x4   :  { %s39_s10 = sshll.u32 %s3823_s30, 4  ;;  %s40_s10 = int_to_ptr.vmem [resolvable:$true] %s39_s10 }
   0x5   :  { %s3723_s11 = scalar_lea.vmem %s40_s10, 64  ;;  %p3728_p1 = scmp.lt.s32.totalorder %s40_s10, %s40_s10 }
   0x6   :  { %p3724_p0 = scmp.ne.s32.totalorder %s40_s10, %s3723_s11  ;;  %p3729_p2 = scmp.lt.s32.totalorder %s3723_s11, %s3723_s11 }
   0x8   :  { %p3730_p3 = por %p3729_p2, %p3728_p1 }
   0xa   :  { %p3731_p4 = pnand %p3730_p3, %p3724_p0 }
   0xc   :  { %3734 = shalt.err (!%p3731_p4)
}
   0xd   :  { %s3824_s12 = smov 32   ;;  %s3825_s13 = smov 2  }
   0xe   :  { %45 = dma.hbm_to_vmem [thread:$0]  %s4585_s3, 64, %s40_s10, [#allocation6], %s3824_s12, %s3824_s12, %s3825_s13  }
   0xf   :  { %s3826_s16 = smov [#allocation2]  }
  0x10   :  { %s23_s17 = sshll.u32 %s3826_s16, 4  ;;  %s24_s17 = int_to_ptr.vmem [resolvable:$true] %s23_s17 }
  0x11   :  { %s3743_s18 = scalar_lea.vmem %s24_s17, 256  ;;  %p3748_p6 = scmp.lt.s32.totalorder %s24_s17, %s24_s17 }
  0x12   :  { %p3744_p5 = scmp.ne.s32.totalorder %s24_s17, %s3743_s18  ;;  %p3749_p7 = scmp.lt.s32.totalorder %s3743_s18, %s3743_s18 }
  0x14   :  { %p3750_p8 = por %p3749_p7, %p3748_p6 }
  0x16   :  { %p3751_p9 = pnand %p3750_p8, %p3744_p5 }
  0x18   :  { %3754 = shalt.err (!%p3751_p9)
}
  0x19   :  { %s3827_s19 = smov 128   ;;  %s3828_s20 = smov 8  }
  0x1a   :  { %29 = dma.hbm_to_vmem [thread:$0]  %s4582_s0, 256, %s24_s17, [#allocation3], %s3827_s19, %s3827_s19, %s3828_s20  }
  0x1b   :  { %s3829_s3 = smov [#allocation7]  }
  0x1c   :  { %s53_s23 = sshll.u32 %s3829_s3, 4  ;;  %s54_s23 = int_to_ptr.vmem [resolvable:$true] %s53_s23 }
  0x1d   :  { %s3763_s24 = scalar_lea.vmem %s54_s23, 1024  ;;  %p3768_p11 = scmp.lt.s32.totalorder %s54_s23, %s54_s23 }
  0x1e   :  { %p3764_p10 = scmp.ne.s32.totalorder %s54_s23, %s3763_s24  ;;  %p3769_p12 = scmp.lt.s32.totalorder %s3763_s24, %s3763_s24 }
  0x20   :  { %p3770_p13 = por %p3769_p12, %p3768_p11 }
  0x22   :  { %p3771_p0 = pnand %p3770_p13, %p3764_p10 }
  0x24   :  { %3774 = shalt.err (!%p3771_p0)
}
  0x25   :  { %s3830_s25 = smov 64   ;;  %s3831_s26 = smov 4  }
  0x26   :  { %59 = dma.hbm_to_vmem [thread:$0]  %s4587_s5, 1024, %s54_s23, [#allocation6], %s3830_s25, %s3830_s25, %s3831_s26  }
  0x27   :  { %s3832_s29 = smov [#allocation8]  }
  0x28   :  { %s67_s0 = sshll.u32 %s3832_s29, 4  ;;  %s68_s0 = int_to_ptr.vmem [resolvable:$true] %s67_s0 }
  0x29   :  { %s3783_s30 = scalar_lea.vmem %s68_s0, 256  ;;  %p3788_p2 = scmp.lt.s32.totalorder %s68_s0, %s68_s0 }
  0x2a   :  { %p3784_p1 = scmp.ne.s32.totalorder %s68_s0, %s3783_s30  ;;  %p3789_p3 = scmp.lt.s32.totalorder %s3783_s30, %s3783_s30 }
  0x2c   :  { %p3790_p4 = por %p3789_p3, %p3788_p2 }
  0x2e   :  { %p3791_p5 = pnand %p3790_p4, %p3784_p1 }
  0x30   :  { %3794 = shalt.err (!%p3791_p5)
}
  0x31   :  { %73 = dma.hbm_to_vmem [thread:$0]  %s4589_s7, 256, %s68_s0, [#allocation9], %s3827_s19, %s3827_s19, %s3828_s20  }
  0x32   :  { %3815 = dma.done.wait [#allocation3], 256  }
  0x33   :  { %3816 = vsyncadd [#allocation3], 4294967040 }
  0x34   :  { %3817 = dma.done.wait [#allocation6], 1088  }
  0x35   :  { %3818 = vsyncadd [#allocation6], 4294966208 }
  0x36   :  { %3819 = dma.done.wait [#allocation9], 256  }
  0x37   :  { %3820 = vsyncadd [#allocation9], 4294967040  ;;  %vm136_vm0 = vcmask 523264   ;;  %v89_v0 = vld [vmem:[#allocation2] sm:$0xff]  ;;  %v90_v1 = vld [vmem:[#allocation2 + $0x8] sm:$0xff]  ;;  %v3833_v18 = vmov 0   ;;  %v92_v29 = vlaneseq }
  0x38   :  { %v137_v2 = vsel %vm136_vm0, %v89_v0, 0.0  ;;  %v140_v3 = vsel %vm136_vm0, %v90_v1, 0.0  ;;  %v3556_v14 = vld [vmem:[%s4584_s2 + $0x34] ss:$8 sps:$4 sm:$0xff]   ;;  %v3558_v15 = vld [vmem:[%s4584_s2 + $0x30] ss:$8 sps:$4 sm:$0xff]   ;;  %272 = vmatprep.mubr.bf16.mxu1 %v3833_v18 }
  0x39   :  { %138 = vadd.xlane.f32.xlu0 %v137_v2  ;;  %v3559_v16 = vld [vmem:[%s4584_s2 + $0x24] ss:$8 sps:$4 sm:$0xff]   ;;  %248 = vmatprep.subr.bf16.mxu1 %v3556_v14  ;;  %v3561_v17 = vld [vmem:[%s4584_s2 + $0x20] ss:$8 sps:$4 sm:$0xff]   ;;  %v3562_v19 = vld [vmem:[%s4584_s2 + $0x14] ss:$8 sps:$4 sm:$0xff]  }
  0x3a   :  { %249 = vmatpush1.bf16.msra.mxu1 %v3558_v15  ;;  %v3564_v20 = vld [vmem:[%s4584_s2 + $0x10] ss:$8 sps:$4 sm:$0xff]   ;;  %v3565_v21 = vld [vmem:[%s4584_s2 + $0x4] ss:$8 sps:$4 sm:$0xff]   ;;  %v3567_v22 = vld [vmem:[%s4584_s2] ss:$8 sps:$4 sm:$0xff]  }
  0x3b   :  { %250 = vmatprep.subr.bf16.mxu1 %v3559_v16  ;;  %v3945_v30 = vshrl.u32 %v92_v29, 7  ;;  %v3950_v32 = vld [vmem:[#allocation8] sm:$0xff]  ;;  %v3834_v45 = vmov 0.0   ;;  %v185_v46 = vld [vmem:[#allocation5] sm:$0x3]  ;;  %vm3835_vm1 = vmmov 0  }
  0x3c   :  { %3238 = vmatprep.subr.bf16.mxu0 %v3834_v45  ;;  %3240 = vmatprep.mubr.msk.bf16.mxu0 %vm3835_vm1, %v3834_v45  ;;  %vm420_vm2 = vcmask 1043456   ;;  %vm297_vm3 = vcmask 130048   ;;  %vm392_vm5 = vcmask 64512   ;;  %s3838_s30 = smov 112   ;;  %s3839_s10 = smov 96   ;;  %vm1196_vm6 = vcmask 261120  }
  0x3d   :  { %141 = vadd.xlane.f32.xlu0 %v140_v3  ;;  %v3948_v31 = vsub.s32 0, %v3945_v30  ;;  %v3955_v36 = vsub.s32 1, %v3945_v30  ;;  %v3836_v3 = vmov 1966171168   ;;  %s3840_s11 = smov 16   ;;  %s3841_s5 = smov 80  }
  0x3e   :  { %251 = vmatpush1.bf16.msra.mxu1 %v3561_v17  ;;  %vm1199_vm7 = vcmask 392192   ;;  %s3842_s17 = smov [#allocation10]  }
  0x3f   :  { %252 = vmatprep.subr.bf16.mxu1 %v3562_v19  ;;  %v167_v35 = vrot.slane %v3950_v32, %v3948_v31  ;;  %v173_v40 = vrot.slane %v3950_v32, %v3955_v36  ;;  %v190_v47 = vrot.slane %v185_v46, %v3948_v31  ;;  %v194_v48 = vrot.slane %v185_v46, %v3955_v36 }
  0x42   :  { %253 = vmatpush1.bf16.msra.mxu1 %v3564_v20 }
  0x43   :  { %254 = vmatprep.subr.bf16.mxu1 %v3565_v21 }
  0x46   :  { %255 = vmatpush1.bf16.msra.mxu1 %v3567_v22 }
  0x47   :  { %3226 = vmatprep.subr.bf16.mxu1 %v3834_v45 }
  0xc2   :  { %v139_v4 = vpop.xlane.xlu0 %138 }
  0xc3   :  { %v144_v5 = vmul.f32 0.015625, %v139_v4  ;;  %v108_v4 = vunpack.c.l.s4 %v3836_v3 }
  0xc5   :  { %v146_v6 = vsub.f32 %v89_v0, %v144_v5  ;;  %v109_v5 = vunpack.c.0.s8 %v108_v4 }
  0xc6   :  { %v142_v7 = vpop.xlane.xlu0 %141 }
  0xc7   :  { %v145_v8 = vmul.f32 0.015625, %v142_v7  ;;  %v148_v9 = vmul.f32 %v146_v6, %v146_v6  ;;  %v2985_v7 = vld.sshfl [vmem:[%s4583_s1] sm:$0x11 pattern:$0x75316420]  ;;  %s3837_s1 = smov 48  }
  0xc9   :  { %v147_v10 = vsub.f32 %v90_v1, %v145_v8  ;;  %v150_v11 = vsel %vm136_vm0, %v148_v9, 0.0  ;;  %v95_v8 = vand.u32 127, %v92_v29 }
  0xca   :  { %151 = vadd.xlane.f32.xlu1 %v150_v11  ;;  %v106_v11 = vcombine.high %v2985_v7, %v2985_v7 }
  0xcb   :  { %v149_v12 = vmul.f32 %v147_v10, %v147_v10  ;;  %vm96_vm4 = vcmp.gt.s32.totalorder %v95_v8, %v3945_v30 }
  0xcd   :  { %v153_v13 = vsel %vm136_vm0, %v149_v12, 0.0  ;;  %v97_v12 = vsel %vm96_vm4, -1e+09, %v3834_v45 }
  0xce   :  { %154 = vadd.xlane.f32.xlu1 %v153_v13 }
 0x153   :  { %v152_v23 = vpop.xlane.xlu1 %151 }
 0x154   :  { %v156_v24 = vmul.f32 0.015625, %v152_v23 }
 0x156   :  { %v158_v25 = vadd.f32 1e-05, %v156_v24 }
 0x157   :  { %v155_v26 = vpop.xlane.xlu1 %154 }
 0x158   :  { %3612 = vrsqrt.f32 %v158_v25  ;;  %v157_v27 = vmul.f32 0.015625, %v155_v26 }
 0x15a   :  { %v159_v28 = vadd.f32 1e-05, %v157_v27 }
 0x15c   :  { %3614 = vrsqrt.f32 %v159_v28 }
 0x165   :  { %v3613_v33 = vpop.eup %3612 }
 0x166   :  { %v162_v34 = vmul.f32 %v3613_v33, %v146_v6  ;;  %v112_v6 = vsub.s32 %v109_v5, %v3945_v30 }
 0x168   :  { %v168_v39 = vmul.f32 %v167_v35, %v162_v34  ;;  %v113_v9 = vrot.slane %v2985_v7, %v112_v6  ;;  %v120_v14 = vrot.slane %v106_v11, %v112_v6 }
 0x169   :  { %v3615_v37 = vpop.eup %3614 }
 0x16a   :  { %v163_v38 = vmul.f32 %v3615_v37, %v147_v10  ;;  %v174_v42 = vadd.f32 %v173_v40, %v168_v39  ;;  %v124_v10 = vrot.slane %v113_v9, %v3948_v31  ;;  %v128_v17 = vrot.slane %v120_v14, %v3948_v31 }
 0x16c   :  { %v169_v41 = vmul.f32 %v167_v35, %v163_v38  ;;  %v4006_v13 = vadd.f32 %v124_v10, %v97_v12  ;;  %v4011_v22 = vadd.f32 %v128_v17, %v97_v12 }
 0x16e   :  { %v175_v43 = vadd.f32 %v173_v40, %v169_v41 }
 0x170   :  { %v176_v44 = vpack.c.bf16 %v175_v43, %v174_v42 }
 0x172   :  { %2994 = vmatmul.mubr.msk.bf16.vlgmr.msra.gmra.mxu1 %vm136_vm0, %v176_v44 }
 0x173   :  { %3228 = vmatprep.mubr.msk.bf16.mxu1 %vm3835_vm1, %v3834_v45 }
 0x232   :  { %v274_v49 = vpop.f32.mrf.mxu1 }
 0x233   :  { %v275_v50 = vadd.f32 %v274_v49, %v190_v47 }
 0x234   :  { %v276_v51 = vpop.f32.mrf.mxu1 }
 0x235   :  { %v3968_v52 = vpack.c.bf16 %v275_v50, %v275_v50  ;;  %v277_v53 = vadd.f32 %v276_v51, %v194_v48 }
 0x236   :  { %v278_v54 = vpop.f32.mrf.mxu1 }
 0x237   :  { %v3970_v55 = vpack.c.bf16 %v277_v53, %v277_v53  ;;  %v279_v56 = vadd.f32 %v278_v54, %v190_v47  ;;  %295 = vrot.lane.b32.xlu0 %v3968_v52, %s3830_s25 }
 0x238   :  { %v280_v61 = vpop.f32.mrf.mxu1 }
 0x239   :  { %v3974_v57 = vpack.c.bf16 %v279_v56, %v279_v56  ;;  %v422_v58 = vsel %vm420_vm2, %v3970_v55, 0  ;;  %v281_v63 = vadd.f32 %v280_v61, %v194_v48 }
 0x23a   :  { %3239 = vmatpush3.bf16.msra.mxu0 %v422_v58 }
 0x23b   :  { %344 = vrot.lane.b32.xlu1 %v3974_v57, %s3830_s25  ;;  %3250 = vmatprep.subr.bf16.mxu0 %v3834_v45  ;;  %v3989_v1 = vpack.c.bf16 %v281_v63, %v281_v63 }
 0x23d   :  { %v468_v2 = vsel %vm420_vm2, %v3989_v1, 0 }
 0x2a9   :  { %v296_v59 = vpop.permute.xlu0 %295 }
 0x2aa   :  { %v302_v60 = vsel %vm297_vm3, %v296_v59, 0 }
 0x2ab   :  { %3227 = vmatpush3.bf16.xpose.msra.mxu1 %v302_v60 }
 0x2ac   :  { %3232 = vmatprep.subr.bf16.mxu1 %v3834_v45 }
 0x2ad   :  { %v345_v62 = vpop.permute.xlu1 %344 }
 0x2ae   :  { %v350_v0 = vsel %vm297_vm3, %v345_v62, 0 }
 0x2b2   :  { %3229 = vmatmul.mubr.msk.bf16.vlgmr.msra.gmra.mxu1 %vm297_vm3, %v3968_v52 }
 0x2b3   :  { %3233 = vmatpush3.bf16.xpose.msra.mxu1 %v350_v0  ;;  %3234 = vmatprep.mubr.msk.bf16.mxu1 %vm3835_vm1, %v3834_v45 }
 0x2b4   :  { %3244 = vmatprep.subr.bf16.mxu1 %v3834_v45 }
 0x2ba   :  { %3235 = vmatmul.mubr.msk.bf16.vlgmr.msra.gmra.mxu1 %vm297_vm3, %v3974_v57 }
 0x2bb   :  { %3245 = vmatpush3.bf16.msra.mxu1 %v468_v2  ;;  %3246 = vmatprep.mubr.msk.bf16.mxu1 %vm3835_vm1, %v3834_v45 }
 0x2bc   :  { %3256 = vmatprep.subr.bf16.mxu1 %v3834_v45 }
 0x372   :  { %v338_v15 = vpop.f32.mrf.mxu1 }
 0x373   :  { %v339_v16 = vadd.f32 %v338_v15, %v4006_v13 }
 0x374   :  { %v3230_v19 = vpop.f32.mrf.mxu1 }
 0x375   :  { %v393_v20 = vsel %vm392_vm5, %v339_v16, -inf }
 0x376   :  { %394 = vmax.xlane.f32.xlu1 %v393_v20  ;;  %v341_v21 = vpop.f32.mrf.mxu1 }
 0x378   :  { %v3231_v23 = vpop.f32.mrf.mxu1 }
 0x37a   :  { %v386_v24 = vpop.f32.mrf.mxu1 }
 0x37b   :  { %v387_v25 = vadd.f32 %v386_v24, %v4011_v22 }
 0x37c   :  { %v3236_v26 = vpop.f32.mrf.mxu1 }
 0x37d   :  { %v396_v27 = vsel %vm392_vm5, %v387_v25, -inf }
 0x37e   :  { %397 = vmax.xlane.f32.xlu0 %v396_v27  ;;  %v389_v28 = vpop.f32.mrf.mxu1 }
 0x380   :  { %v3237_v29 = vpop.f32.mrf.mxu1 }
 0x387   :  { %562 = vrot.lane.b32.xlu1 %v3974_v57, %s3837_s1 }
 0x3ff   :  { %v395_v33 = vpop.xlane.xlu1 %394 }
 0x400   :  { %v399_v34 = vsub.f32 %v339_v16, %v395_v33 }
 0x402   :  { %v401_v35 = vmul.f32 1.442695, %v399_v34 }
 0x403   :  { %v563_v46 = vpop.permute.xlu1 %562 }
 0x404   :  { %3616 = vpow2.f32 %v401_v35  ;;  %v568_v60 = vsel %vm297_vm3, %v563_v46, 0 }
 0x407   :  { %v398_v37 = vpop.xlane.xlu0 %397 }
 0x408   :  { %v400_v38 = vsub.f32 %v387_v25, %v398_v37 }
 0x40a   :  { %v403_v39 = vmul.f32 1.442695, %v400_v38 }
 0x40c   :  { %3618 = vpow2.f32 %v403_v39 }
 0x411   :  { %v3617_v40 = vpop.eup %3616 }
 0x412   :  { %v405_v41 = vsel %vm392_vm5, %v3617_v40, 0.0 }
 0x413   :  { %406 = vadd.xlane.f32.xlu0 %v405_v41 }
 0x419   :  { %v3619_v42 = vpop.eup %3618 }
 0x41a   :  { %v408_v43 = vsel %vm392_vm5, %v3619_v42, 0.0 }
 0x41b   :  { %409 = vadd.xlane.f32.xlu1 %v408_v43 }
 0x429   :  { %512 = vrot.lane.b32.xlu0 %v3968_v52, %s3837_s1 }
 0x42c   :  { %510 = vrot.lane.b32.xlu1 %v3968_v52, %s3838_s30 }
 0x430   :  { %560 = vrot.lane.b32.xlu1 %v3974_v57, %s3838_s30 }
 0x49c   :  { %v407_v44 = vpop.xlane.xlu0 %406 }
 0x49d   :  { %3620 = vrcp.f32 %v407_v44 }
 0x4a0   :  { %v513_v50 = vpop.permute.xlu0 %512 }
 0x4a1   :  { %v518_v53 = vsel %vm297_vm3, %v513_v50, 0 }
 0x4a4   :  { %v410_v47 = vpop.xlane.xlu1 %409 }
 0x4a5   :  { %3622 = vrcp.f32 %v410_v47 }
 0x4a8   :  { %v511_v59 = vpop.permute.xlu1 %510 }
 0x4aa   :  { %v3621_v48 = vpop.eup %3620 }
 0x4ab   :  { %v413_v49 = vmul.f32 %v3621_v48, %v3617_v40 }
 0x4ac   :  { %v561_v61 = vpop.permute.xlu1 %560 }
 0x4ad   :  { %v415_v51 = vpack.c.bf16 %v413_v49, %v413_v49 }
 0x4af   :  { %3241 = vmatmul.mubr.msk.bf16.vlgmr.msra.gmra.mxu0 %vm392_vm5, %v415_v51 }
 0x4b0   :  { %3251 = vmatpush3.bf16.xpose.msra.mxu0 %v518_v53  ;;  %3252 = vmatprep.mubr.msk.bf16.mxu0 %vm3835_vm1, %v3834_v45 }
 0x4b1   :  { %3262 = vmatprep.subr.bf16.mxu0 %v3834_v45 }
 0x4b2   :  { %v3623_v54 = vpop.eup %3622 }
 0x4b3   :  { %v414_v56 = vmul.f32 %v3623_v54, %v3619_v42 }
 0x4b5   :  { %v416_v58 = vpack.c.bf16 %v414_v56, %v414_v56 }
 0x4b7   :  { %3247 = vmatmul.mubr.msk.bf16.vlgmr.msra.gmra.mxu1 %vm392_vm5, %v416_v58  ;;  %3253 = vmatmul.mubr.msk.bf16.vlgmr.msra.gmra.mxu0 %vm297_vm3, %v511_v59 }
 0x4b8   :  { %3257 = vmatpush3.bf16.xpose.msra.mxu1 %v568_v60  ;;  %3258 = vmatprep.mubr.msk.bf16.mxu1 %vm3835_vm1, %v3834_v45 }
 0x4b9   :  { %3268 = vmatprep.subr.bf16.mxu1 %v3834_v45  ;;  %3264 = vmatprep.mubr.msk.bf16.mxu0 %vm3835_vm1, %v3834_v45 }
 0x4bf   :  { %3259 = vmatmul.mubr.msk.bf16.vlgmr.msra.gmra.mxu1 %vm297_vm3, %v561_v61 }
 0x4c0   :  { %3270 = vmatprep.mubr.msk.bf16.mxu1 %vm3835_vm1, %v3834_v45 }
 0x56f   :  { %v4041_v62 = vpop.f32.mrf.mxu0 }
 0x571   :  { %v3242_v63 = vpop.f32.mrf.mxu0 }
 0x573   :  { %v461_v0 = vpop.f32.mrf.mxu0 }
 0x575   :  { %v3243_v2 = vpop.f32.mrf.mxu0 }
 0x577   :  { %v4043_v3 = vpop.f32.mrf.mxu1  ;;  %v554_v4 = vpop.f32.mrf.mxu0 }
 0x578   :  { %v555_v5 = vadd.f32 %v554_v4, %v4006_v13 }
 0x579   :  { %v3248_v6 = vpop.f32.mrf.mxu1  ;;  %v3254_v7 = vpop.f32.mrf.mxu0 }
 0x57a   :  { %v610_v8 = vsel %vm392_vm5, %v555_v5, -inf }
 0x57b   :  { %611 = vmax.xlane.f32.xlu0 %v610_v8  ;;  %v507_v9 = vpop.f32.mrf.mxu1  ;;  %v557_v10 = vpop.f32.mrf.mxu0 }
 0x57d   :  { %v3249_v11 = vpop.f32.mrf.mxu1  ;;  %v3255_v12 = vpop.f32.mrf.mxu0 }
 0x57f   :  { %v604_v14 = vpop.f32.mrf.mxu1 }
 0x580   :  { %v605_v15 = vadd.f32 %v604_v14, %v4011_v22 }
 0x581   :  { %v3260_v16 = vpop.f32.mrf.mxu1 }
 0x582   :  { %v613_v17 = vsel %vm392_vm5, %v605_v15, -inf }
 0x583   :  { %614 = vmax.xlane.f32.xlu1 %v613_v17  ;;  %v607_v19 = vpop.f32.mrf.mxu1 }
 0x585   :  { %v3261_v20 = vpop.f32.mrf.mxu1 }
 0x594   :  { %682 = vrot.lane.b32.xlu1 %v3989_v1, %s3838_s30 }
 0x598   :  { %732 = vrot.lane.b32.xlu1 %v3968_v52, %s3824_s12 }
 0x59c   :  { %782 = vrot.lane.b32.xlu1 %v3974_v57, %s3824_s12 }
 0x5a0   :  { %780 = vrot.lane.b32.xlu1 %v3974_v57, %s3839_s10 }
 0x604   :  { %v612_v21 = vpop.xlane.xlu0 %611 }
 0x605   :  { %v616_v23 = vsub.f32 %v555_v5, %v612_v21 }
 0x607   :  { %v618_v24 = vmul.f32 1.442695, %v616_v23 }
 0x609   :  { %3624 = vpow2.f32 %v618_v24 }
 0x60c   :  { %v615_v25 = vpop.xlane.xlu1 %614 }
 0x60d   :  { %v617_v26 = vsub.f32 %v605_v15, %v615_v25 }
 0x60f   :  { %v620_v27 = vmul.f32 1.442695, %v617_v26 }
 0x610   :  { %v683_v28 = vpop.permute.xlu1 %682 }
 0x611   :  { %3626 = vpow2.f32 %v620_v27  ;;  %v688_v29 = vsel %vm420_vm2, %v683_v28, 0 }
 0x612   :  { %3269 = vmatpush3.bf16.msra.mxu1 %v688_v29 }
 0x613   :  { %3280 = vmatprep.subr.bf16.mxu1 %v3834_v45 }
 0x614   :  { %v733_v44 = vpop.permute.xlu1 %732 }
 0x615   :  { %v738_v47 = vsel %vm297_vm3, %v733_v44, 0 }
 0x616   :  { %v3625_v33 = vpop.eup %3624 }
 0x617   :  { %v622_v34 = vsel %vm392_vm5, %v3625_v33, 0.0 }
 0x618   :  { %623 = vadd.xlane.f32.xlu0 %v622_v34  ;;  %v783_v50 = vpop.permute.xlu1 %782 }
 0x619   :  { %v788_v54 = vsel %vm297_vm3, %v783_v50, 0 }
 0x61c   :  { %v781_v56 = vpop.permute.xlu1 %780 }
 0x61e   :  { %v3627_v35 = vpop.eup %3626 }
 0x61f   :  { %v625_v37 = vsel %vm392_vm5, %v3627_v35, 0.0 }
 0x620   :  { %626 = vadd.xlane.f32.xlu0 %v625_v37 }
 0x636   :  { %634 = vrot.lane.b32.xlu0 %v3970_v55, %s3838_s30 }
 0x63a   :  { %730 = vrot.lane.b32.xlu0 %v3968_v52, %s3839_s10 }
 0x6a1   :  { %v624_v38 = vpop.xlane.xlu0 %623 }
 0x6a2   :  { %3628 = vrcp.f32 %v624_v38 }
 0x6a9   :  { %v627_v39 = vpop.xlane.xlu0 %626 }
 0x6aa   :  { %3630 = vrcp.f32 %v627_v39 }
 0x6ad   :  { %v635_v40 = vpop.permute.xlu0 %634 }
 0x6ae   :  { %v640_v41 = vsel %vm420_vm2, %v635_v40, 0 }
 0x6af   :  { %v3629_v42 = vpop.eup %3628  ;;  %3263 = vmatpush3.bf16.msra.mxu0 %v640_v41 }
 0x6b0   :  { %3274 = vmatprep.subr.bf16.mxu0 %v3834_v45  ;;  %v630_v43 = vmul.f32 %v3629_v42, %v3625_v33 }
 0x6b1   :  { %v731_v53 = vpop.permute.xlu0 %730 }
 0x6b2   :  { %v632_v46 = vpack.c.bf16 %v630_v43, %v630_v43 }
 0x6b4   :  { %3265 = vmatmul.mubr.msk.bf16.vlgmr.msra.gmra.mxu0 %vm392_vm5, %v632_v46 }
 0x6b5   :  { %3275 = vmatpush3.bf16.xpose.msra.mxu0 %v738_v47  ;;  %3276 = vmatprep.mubr.msk.bf16.mxu0 %vm3835_vm1, %v3834_v45 }
 0x6b6   :  { %3286 = vmatprep.subr.bf16.mxu0 %v3834_v45 }
 0x6b7   :  { %v3631_v48 = vpop.eup %3630 }
 0x6b8   :  { %v631_v49 = vmul.f32 %v3631_v48, %v3627_v35 }
 0x6ba   :  { %v633_v51 = vpack.c.bf16 %v631_v49, %v631_v49 }
 0x6bc   :  { %3271 = vmatmul.mubr.msk.bf16.vlgmr.msra.gmra.mxu1 %vm392_vm5, %v633_v51  ;;  %3277 = vmatmul.mubr.msk.bf16.vlgmr.msra.gmra.mxu0 %vm297_vm3, %v731_v53 }
 0x6bd   :  { %3281 = vmatpush3.bf16.xpose.msra.mxu1 %v788_v54  ;;  %3282 = vmatprep.mubr.msk.bf16.mxu1 %vm3835_vm1, %v3834_v45 }
 0x6be   :  { %3292 = vmatprep.subr.bf16.mxu1 %v3834_v45  ;;  %3288 = vmatprep.mubr.msk.bf16.mxu0 %vm3835_vm1, %v3834_v45 }
 0x6c4   :  { %3283 = vmatmul.mubr.msk.bf16.vlgmr.msra.gmra.mxu1 %vm297_vm3, %v781_v56 }
 0x6c5   :  { %3294 = vmatprep.mubr.msk.bf16.mxu1 %vm3835_vm1, %v3834_v45 }
 0x774   :  { %v4083_v58 = vpop.f32.mrf.mxu0 }
 0x776   :  { %v3266_v59 = vpop.f32.mrf.mxu0 }
 0x778   :  { %v679_v60 = vpop.f32.mrf.mxu0 }
 0x77a   :  { %v3267_v61 = vpop.f32.mrf.mxu0 }
 0x77c   :  { %v4085_v63 = vpop.f32.mrf.mxu1  ;;  %v774_v0 = vpop.f32.mrf.mxu0 }
 0x77d   :  { %v3526_v2 = vpack.i.bf16 %v4085_v63, %v4083_v58  ;;  %v775_v4 = vadd.f32 %v774_v0, %v4006_v13 }
 0x77e   :  { %v3272_v5 = vpop.f32.mrf.mxu1  ;;  %v3278_v6 = vpop.f32.mrf.mxu0 }
 0x77f   :  { %v830_v7 = vsel %vm392_vm5, %v775_v4, -inf }
 0x780   :  { %831 = vmax.xlane.f32.xlu0 %v830_v7  ;;  %v727_v8 = vpop.f32.mrf.mxu1  ;;  %v777_v9 = vpop.f32.mrf.mxu0 }
 0x782   :  { %v3273_v10 = vpop.f32.mrf.mxu1  ;;  %v3279_v11 = vpop.f32.mrf.mxu0 }
 0x784   :  { %v824_v12 = vpop.f32.mrf.mxu1 }
 0x785   :  { %v825_v14 = vadd.f32 %v824_v12, %v4011_v22 }
 0x786   :  { %v3284_v15 = vpop.f32.mrf.mxu1 }
 0x787   :  { %v833_v16 = vsel %vm392_vm5, %v825_v14, -inf }
 0x788   :  { %834 = vmax.xlane.f32.xlu1 %v833_v16  ;;  %v827_v17 = vpop.f32.mrf.mxu1 }
 0x78a   :  { %v3285_v19 = vpop.f32.mrf.mxu1 }
 0x799   :  { %902 = vrot.lane.b32.xlu1 %v3989_v1, %s3839_s10 }
 0x79d   :  { %952 = vrot.lane.b32.xlu1 %v3968_v52, %s3840_s11 }
 0x7a1   :  { %1002 = vrot.lane.b32.xlu1 %v3974_v57, %s3840_s11 }
 0x7a5   :  { %1000 = vrot.lane.b32.xlu1 %v3974_v57, %s3841_s5 }
 0x809   :  { %v832_v20 = vpop.xlane.xlu0 %831 }
 0x80a   :  { %v836_v21 = vsub.f32 %v775_v4, %v832_v20 }
 0x80c   :  { %v838_v23 = vmul.f32 1.442695, %v836_v21 }
 0x80e   :  { %3632 = vpow2.f32 %v838_v23 }
 0x811   :  { %v835_v24 = vpop.xlane.xlu1 %834 }
 0x812   :  { %v837_v25 = vsub.f32 %v825_v14, %v835_v24 }
 0x814   :  { %v840_v26 = vmul.f32 1.442695, %v837_v25 }
 0x815   :  { %v903_v27 = vpop.permute.xlu1 %902 }
 0x816   :  { %3634 = vpow2.f32 %v840_v26  ;;  %v908_v28 = vsel %vm420_vm2, %v903_v27, 0 }
 0x817   :  { %3293 = vmatpush3.bf16.msra.mxu1 %v908_v28 }
 0x818   :  { %3304 = vmatprep.subr.bf16.mxu1 %v3834_v45 }
 0x819   :  { %v953_v42 = vpop.permute.xlu1 %952 }
 0x81a   :  { %v958_v44 = vsel %vm297_vm3, %v953_v42, 0  ;;  %v3569_v42 = vld [vmem:[%s4586_s4 + $0x10] sm:$0xff]  }
 0x81b   :  { %v3633_v29 = vpop.eup %3632 }
 0x81c   :  { %v842_v33 = vsel %vm392_vm5, %v3633_v29, 0.0 }
 0x81d   :  { %843 = vadd.xlane.f32.xlu0 %v842_v33  ;;  %v1003_v47 = vpop.permute.xlu1 %1002 }
 0x81e   :  { %v1008_v50 = vsel %vm297_vm3, %v1003_v47, 0 }
 0x821   :  { %v1001_v51 = vpop.permute.xlu1 %1000 }
 0x823   :  { %v3635_v34 = vpop.eup %3634 }
 0x824   :  { %v845_v57 = vsel %vm392_vm5, %v3635_v34, 0.0 }
 0x825   :  { %846 = vadd.xlane.f32.xlu0 %v845_v57 }
 0x83b   :  { %854 = vrot.lane.b32.xlu0 %v3970_v55, %s3839_s10 }
 0x83f   :  { %950 = vrot.lane.b32.xlu0 %v3968_v52, %s3841_s5 }
 0x8a6   :  { %v844_v35 = vpop.xlane.xlu0 %843 }
 0x8a7   :  { %3636 = vrcp.f32 %v844_v35 }
 0x8ae   :  { %v847_v37 = vpop.xlane.xlu0 %846 }
 0x8af   :  { %3638 = vrcp.f32 %v847_v37 }
 0x8b2   :  { %v855_v38 = vpop.permute.xlu0 %854 }
 0x8b3   :  { %v860_v39 = vsel %vm420_vm2, %v855_v38, 0 }
 0x8b4   :  { %v3637_v40 = vpop.eup %3636  ;;  %3287 = vmatpush3.bf16.msra.mxu0 %v860_v39 }
 0x8b5   :  { %3298 = vmatprep.subr.bf16.mxu0 %v3834_v45  ;;  %v850_v41 = vmul.f32 %v3637_v40, %v3633_v29 }
 0x8b6   :  { %v951_v49 = vpop.permute.xlu0 %950 }
 0x8b7   :  { %v852_v43 = vpack.c.bf16 %v850_v41, %v850_v41  ;;  %v3568_v41 = vld [vmem:[%s4586_s4 + $0x18] sm:$0xff]  }
 0x8b9   :  { %3289 = vmatmul.mubr.msk.bf16.vlgmr.msra.gmra.mxu0 %vm392_vm5, %v852_v43  ;;  %v3570_v43 = vld [vmem:[%s4586_s4 + $0x8] sm:$0xff]  }
 0x8ba   :  { %3299 = vmatpush3.bf16.xpose.msra.mxu0 %v958_v44  ;;  %3300 = vmatprep.mubr.msk.bf16.mxu0 %vm3835_vm1, %v3834_v45  ;;  %v3571_v44 = vld [vmem:[%s4586_s4] sm:$0xff]  }
 0x8bb   :  { %3310 = vmatprep.subr.bf16.mxu0 %v3834_v45 }
 0x8bc   :  { %v3639_v52 = vpop.eup %3638 }
 0x8bd   :  { %v851_v46 = vmul.f32 %v3639_v52, %v3635_v34 }
 0x8bf   :  { %v853_v48 = vpack.c.bf16 %v851_v46, %v851_v46 }
 0x8c1   :  { %3295 = vmatmul.mubr.msk.bf16.vlgmr.msra.gmra.mxu1 %vm392_vm5, %v853_v48  ;;  %3301 = vmatmul.mubr.msk.bf16.vlgmr.msra.gmra.mxu0 %vm297_vm3, %v951_v49 }
 0x8c2   :  { %3305 = vmatpush3.bf16.xpose.msra.mxu1 %v1008_v50  ;;  %3306 = vmatprep.mubr.msk.bf16.mxu1 %vm3835_vm1, %v3834_v45 }
 0x8c3   :  { %3316 = vmatprep.subr.bf16.mxu1 %v3834_v45  ;;  %3312 = vmatprep.mubr.msk.bf16.mxu0 %vm3835_vm1, %v3834_v45 }
 0x8c9   :  { %3307 = vmatmul.mubr.msk.bf16.vlgmr.msra.gmra.mxu1 %vm297_vm3, %v1001_v51 }
 0x8ca   :  { %3318 = vmatprep.mubr.msk.bf16.mxu1 %vm3835_vm1, %v3834_v45 }
 0x979   :  { %v896_v53 = vpop.f32.mrf.mxu0 }
 0x97b   :  { %v3290_v54 = vpop.f32.mrf.mxu0 }
 0x97d   :  { %v899_v56 = vpop.f32.mrf.mxu0 }
 0x97f   :  { %v3291_v59 = vpop.f32.mrf.mxu0 }
 0x981   :  { %v944_v60 = vpop.f32.mrf.mxu1  ;;  %v994_v61 = vpop.f32.mrf.mxu0 }
 0x982   :  { %v995_v0 = vadd.f32 %v994_v61, %v4006_v13  ;;  %v3531_v19 = vpack.i.bf16 %v944_v60, %v896_v53 }
 0x983   :  { %v3296_v4 = vpop.f32.mrf.mxu1  ;;  %v3302_v5 = vpop.f32.mrf.mxu0 }
 0x984   :  { %v1050_v6 = vsel %vm392_vm5, %v995_v0, -inf }
 0x985   :  { %1051 = vmax.xlane.f32.xlu0 %v1050_v6  ;;  %v947_v7 = vpop.f32.mrf.mxu1  ;;  %v997_v8 = vpop.f32.mrf.mxu0 }
 0x987   :  { %v3297_v9 = vpop.f32.mrf.mxu1  ;;  %v3303_v10 = vpop.f32.mrf.mxu0 }
 0x989   :  { %v1044_v11 = vpop.f32.mrf.mxu1 }
 0x98a   :  { %v1045_v12 = vadd.f32 %v1044_v11, %v4011_v22 }
 0x98b   :  { %v3308_v14 = vpop.f32.mrf.mxu1 }
 0x98c   :  { %v1053_v15 = vsel %vm392_vm5, %v1045_v12, -inf }
 0x98d   :  { %1054 = vmax.xlane.f32.xlu1 %v1053_v15  ;;  %v1047_v16 = vpop.f32.mrf.mxu1 }
 0x98f   :  { %v3309_v17 = vpop.f32.mrf.mxu1 }
 0x99e   :  { %1122 = vrot.lane.b32.xlu1 %v3989_v1, %s3841_s5 }
 0x9a2   :  { %3527 = vrot.lane.b32.xlu1 %v3526_v2, %s3840_s11 }
 0x9a6   :  { %3532 = vrot.lane.b32.xlu1 %v3531_v19, %s3824_s12 }
 0xa0e   :  { %v1052_v20 = vpop.xlane.xlu0 %1051 }
 0xa0f   :  { %v1056_v21 = vsub.f32 %v995_v0, %v1052_v20  ;;  %v3712_v20 = vld [vmem:[#allocation2] sm:$0xff] }
 0xa11   :  { %v1058_v23 = vmul.f32 1.442695, %v1056_v21 }
 0xa13   :  { %3640 = vpow2.f32 %v1058_v23 }
 0xa16   :  { %v1055_v24 = vpop.xlane.xlu1 %1054 }
 0xa17   :  { %v1057_v25 = vsub.f32 %v1045_v12, %v1055_v24 }
 0xa19   :  { %v1060_v26 = vmul.f32 1.442695, %v1057_v25 }
 0xa1a   :  { %v1123_v27 = vpop.permute.xlu1 %1122 }
 0xa1b   :  { %3642 = vpow2.f32 %v1060_v26  ;;  %v1128_v28 = vsel %vm420_vm2, %v1123_v27, 0  ;;  %v3713_v27 = vld [vmem:[#allocation2 + $0x8] sm:$0xff] }
 0xa1c   :  { %3317 = vmatpush3.bf16.msra.mxu1 %v1128_v28 }
 0xa1d   :  { %3334 = vmatprep.subr.bf16.mxu1 %v3834_v45 }
 0xa1e   :  { %v3528_v56 = vpop.permute.xlu1 %3527 }
 0xa1f   :  { %v3530_v60 = vunpack.i.h.bf16 %v3528_v56  ;;  %v3529_v61 = vunpack.i.l.bf16 %v3528_v56 }
 0xa20   :  { %v3641_v1 = vpop.eup %3640 }
 0xa21   :  { %v1062_v58 = vsel %vm392_vm5, %v3641_v1, 0.0  ;;  %v1195_v6 = vsel %vm297_vm3, %v4043_v3, %v3530_v60  ;;  %v1194_v7 = vsel %vm297_vm3, %v4041_v62, %v3529_v61  ;;  %v1213_v3 = vsub.s32 4, %v3945_v30 }
 0xa22   :  { %1063 = vadd.xlane.f32.xlu0 %v1062_v58  ;;  %v3533_v59 = vpop.permute.xlu1 %3532 }
 0xa23   :  { %v3535_v0 = vunpack.i.h.bf16 %v3533_v59  ;;  %v3534_v4 = vunpack.i.l.bf16 %v3533_v59  ;;  %v1214_v62 = vrot.slane %v3950_v32, %v1213_v3 }
 0xa25   :  { %v1197_v10 = vsel %vm1196_vm6, %v1194_v7, %v3534_v4  ;;  %v1198_v11 = vsel %vm1196_vm6, %v1195_v6, %v3535_v0  ;;  %v3576_v6 = vld [vmem:[%s4588_s6 + $0x38] sm:$0xff]   ;;  %v3577_v7 = vld [vmem:[%s4588_s6 + $0x30] sm:$0xff]  }
 0xa28   :  { %v3643_v63 = vpop.eup %3642 }
 0xa29   :  { %v1065_v2 = vsel %vm392_vm5, %v3643_v63, 0.0 }
 0xa2a   :  { %1066 = vadd.xlane.f32.xlu0 %v1065_v2 }
 0xa40   :  { %1074 = vrot.lane.b32.xlu0 %v3970_v55, %s3841_s5 }
 0xaab   :  { %v1064_v29 = vpop.xlane.xlu0 %1063 }
 0xaac   :  { %3644 = vrcp.f32 %v1064_v29 }
 0xab3   :  { %v1067_v33 = vpop.xlane.xlu0 %1066 }
 0xab4   :  { %3646 = vrcp.f32 %v1067_v33 }
 0xab7   :  { %v1075_v34 = vpop.permute.xlu0 %1074 }
 0xab8   :  { %v1080_v57 = vsel %vm420_vm2, %v1075_v34, 0 }
 0xab9   :  { %v3645_v35 = vpop.eup %3644  ;;  %3311 = vmatpush3.bf16.msra.mxu0 %v1080_v57 }
 0xaba   :  { %v1070_v37 = vmul.f32 %v3645_v35, %v3641_v1  ;;  %3322 = vmatprep.subr.bf16.mxu0 %v3834_v45 }
 0xabc   :  { %v1072_v38 = vpack.c.bf16 %v1070_v37, %v1070_v37 }
 0xabe   :  { %3313 = vmatmul.mubr.msk.bf16.vlgmr.msra.gmra.mxu0 %vm392_vm5, %v1072_v38 }
 0xabf   :  { %3330 = vmatprep.mubr.msk.bf16.mxu0 %vm3835_vm1, %v3834_v45  ;;  %3323 = vmatpush3.bf16.msra.mxu0 %v3568_v41  ;;  %v3575_v41 = vld [vmem:[#allocation7] sm:$0xff]  }
 0xac0   :  { %3324 = vmatprep.subr.bf16.mxu0 %v3834_v45 }
 0xac1   :  { %v3647_v39 = vpop.eup %3646 }
 0xac2   :  { %v1071_v55 = vmul.f32 %v3647_v39, %v3643_v63  ;;  %v3572_v39 = vld [vmem:[#allocation7 + $0x18] sm:$0xff]  }
 0xac3   :  { %3325 = vmatpush3.bf16.msra.mxu0 %v3569_v42 }
 0xac4   :  { %v1073_v40 = vpack.c.bf16 %v1071_v55, %v1071_v55  ;;  %3326 = vmatprep.subr.bf16.mxu0 %v3834_v45  ;;  %v3573_v55 = vld [vmem:[#allocation7 + $0x10] sm:$0xff]  }
 0xac6   :  { %3319 = vmatmul.mubr.msk.bf16.vlgmr.msra.gmra.mxu1 %vm392_vm5, %v1073_v40  ;;  %v3574_v40 = vld [vmem:[#allocation7 + $0x8] sm:$0xff]  }
 0xac7   :  { %3342 = vmatprep.mubr.msk.bf16.mxu1 %vm3835_vm1, %v3834_v45  ;;  %3327 = vmatpush3.bf16.msra.mxu0 %v3570_v43 }
 0xac8   :  { %3328 = vmatprep.subr.bf16.mxu0 %v3834_v45  ;;  %3335 = vmatpush3.bf16.msra.mxu1 %v3572_v39 }
 0xac9   :  { %3336 = vmatprep.subr.bf16.mxu1 %v3834_v45 }
 0xacb   :  { %3329 = vmatpush3.bf16.msra.mxu0 %v3571_v44 }
 0xacc   :  { %3346 = vmatprep.subr.bf16.mxu0 %v3834_v45  ;;  %3337 = vmatpush3.bf16.msra.mxu1 %v3573_v55 }
 0xacd   :  { %3338 = vmatprep.subr.bf16.mxu1 %v3834_v45 }
 0xad0   :  { %3339 = vmatpush3.bf16.msra.mxu1 %v3574_v40 }
 0xad1   :  { %3340 = vmatprep.subr.bf16.mxu1 %v3834_v45 }
 0xad4   :  { %3341 = vmatpush3.bf16.msra.mxu1 %v3575_v41 }
 0xb7e   :  { %v1116_v52 = vpop.f32.mrf.mxu0 }
 0xb80   :  { %v3314_v46 = vpop.f32.mrf.mxu0 }
 0xb82   :  { %v1119_v47 = vpop.f32.mrf.mxu0 }
 0xb84   :  { %v3315_v48 = vpop.f32.mrf.mxu0 }
 0xb85   :  { %v1313_v48 = vsub.s32 2, %v3945_v30 }
 0xb86   :  { %v1164_v49 = vpop.f32.mrf.mxu1 }
 0xb87   :  { %v3536_v50 = vpack.i.bf16 %v1164_v49, %v1116_v52 }
 0xb88   :  { %v3320_v51 = vpop.f32.mrf.mxu1 }
 0xb89   :  { %3537 = vrot.lane.b32.xlu0 %v3536_v50, %s3837_s1  ;;  %v1314_v51 = vrot.slane %v3950_v32, %v1313_v48 }
 0xb8a   :  { %v1167_v53 = vpop.f32.mrf.mxu1 }
 0xb8b   :  { %v1319_v53 = vsub.s32 3, %v3945_v30 }
 0xb8c   :  { %v3321_v54 = vpop.f32.mrf.mxu1 }
 0xb8d   :  { %v1320_v60 = vrot.slane %v3950_v32, %v1319_v53 }
 0xbfb   :  { %v3538_v5 = vpop.permute.xlu0 %3537 }
 0xbfc   :  { %v3540_v8 = vunpack.i.h.bf16 %v3538_v5  ;;  %v3539_v9 = vunpack.i.l.bf16 %v3538_v5 }
 0xbfe   :  { %v1201_v12 = vsel %vm1199_vm7, %v1198_v11, %v3540_v8  ;;  %v1200_v14 = vsel %vm1199_vm7, %v1197_v10, %v3539_v9  ;;  %v3578_v8 = vld [vmem:[%s4588_s6 + $0x28] sm:$0xff]   ;;  %v3580_v9 = vld [vmem:[%s4588_s6 + $0x18] sm:$0xff]   ;;  %v3581_v10 = vld [vmem:[%s4588_s6 + $0x10] sm:$0xff]  }
 0xbff   :  { %v1202_v15 = vpack.c.bf16 %v1201_v12, %v1200_v14  ;;  %v3582_v11 = vld [vmem:[%s4588_s6 + $0x8] sm:$0xff]   ;;  %v3583_v12 = vld [vmem:[%s4588_s6] sm:$0xff]   ;;  %v1334_v14 = vsub.s32 6, %v3945_v30 }
 0xc01   :  { %3331 = vmatmul.mubr.msk.bf16.vlgmr.msra.gmra.mxu0 %vm136_vm0, %v1202_v15  ;;  %v1335_v15 = vrot.slane %v3950_v32, %v1334_v14 }
 0xc02   :  { %3362 = vmatprep.mubr.msk.bf16.mxu0 %vm3835_vm1, %v3834_v45  ;;  %3347 = vmatpush3.bf16.msra.mxu0 %v3576_v6  ;;  %v3587_v6 = vld [vmem:[%s4584_s2 + $0x60] ss:$8 sps:$4 sm:$0xff]  }
 0xc03   :  { %3348 = vmatprep.subr.bf16.mxu0 %v3834_v45 }
 0xc06   :  { %3349 = vmatpush3.bf16.msra.mxu0 %v3577_v7  ;;  %v3592_v7 = vld [vmem:[%s4584_s2 + $0x54] ss:$8 sps:$4 sm:$0xff]  }
 0xc07   :  { %3350 = vmatprep.subr.bf16.mxu0 %v3834_v45 }
 0xc0a   :  { %3351 = vmatpush3.bf16.msra.mxu0 %v3578_v8  ;;  %v3590_v8 = vld [vmem:[%s4584_s2 + $0x50] ss:$8 sps:$4 sm:$0xff]  }
 0xc0b   :  { %3352 = vmatprep.subr.bf16.mxu0 %v3834_v45 }
 0xcc1   :  { %v1276_v16 = vpop.f32.mrf.mxu0 }
 0xcc2   :  { %v1277_v17 = vadd.f32 %v1276_v16, %v1214_v62 }
 0xcc3   :  { %v3332_v19 = vpop.f32.mrf.mxu0 }
 0xcc4   :  { %v4184_v21 = vadd.f32 %v3712_v20, %v1277_v17 }
 0xcc5   :  { %v1279_v23 = vpop.f32.mrf.mxu0 }
 0xcc6   :  { %v1280_v24 = vadd.f32 %v1279_v23, %v1214_v62  ;;  %v1285_v25 = vsel %vm136_vm0, %v4184_v21, 0.0 }
 0xcc7   :  { %1286 = vadd.xlane.f32.xlu1 %v1285_v25  ;;  %v3333_v26 = vpop.f32.mrf.mxu0 }
 0xcc8   :  { %v4188_v28 = vadd.f32 %v3713_v27, %v1280_v24 }
 0xcca   :  { %v1288_v1 = vsel %vm136_vm0, %v4188_v28, 0.0 }
 0xccb   :  { %1289 = vadd.xlane.f32.xlu0 %v1288_v1 }
 0xd50   :  { %v1287_v58 = vpop.xlane.xlu1 %1286 }
 0xd51   :  { %v1291_v63 = vmul.f32 0.015625, %v1287_v58 }
 0xd53   :  { %v1293_v2 = vsub.f32 %v4184_v21, %v1291_v63 }
 0xd54   :  { %v1290_v29 = vpop.xlane.xlu0 %1289 }
 0xd55   :  { %v1292_v33 = vmul.f32 0.015625, %v1290_v29  ;;  %v1295_v34 = vmul.f32 %v1293_v2, %v1293_v2 }
 0xd57   :  { %v1294_v57 = vsub.f32 %v4188_v28, %v1292_v33  ;;  %v1297_v35 = vsel %vm136_vm0, %v1295_v34, 0.0 }
 0xd58   :  { %1298 = vadd.xlane.f32.xlu0 %v1297_v35  ;;  %v1439_v35 = vsub.s32 5, %v3945_v30 }
 0xd59   :  { %v1296_v37 = vmul.f32 %v1294_v57, %v1294_v57 }
 0xd5b   :  { %v1300_v38 = vsel %vm136_vm0, %v1296_v37, 0.0  ;;  %v3714_v37 = vld [vmem:[#allocation8] sm:$0xff] }
 0xd5c   :  { %1301 = vadd.xlane.f32.xlu0 %v1300_v38  ;;  %v1440_v38 = vrot.slane %v3714_v37, %v1439_v35 }
 0xde1   :  { %v1299_v42 = vpop.xlane.xlu0 %1298 }
 0xde2   :  { %v1303_v43 = vmul.f32 0.015625, %v1299_v42 }
 0xde4   :  { %v1305_v44 = vadd.f32 1e-05, %v1303_v43 }
 0xde5   :  { %v1302_v52 = vpop.xlane.xlu0 %1301 }
 0xde6   :  { %3648 = vrsqrt.f32 %v1305_v44  ;;  %v1304_v46 = vmul.f32 0.015625, %v1302_v52 }
 0xde8   :  { %v1306_v47 = vadd.f32 1e-05, %v1304_v46 }
 0xdea   :  { %3650 = vrsqrt.f32 %v1306_v47 }
 0xdf3   :  { %v3649_v49 = vpop.eup %3648 }
 0xdf4   :  { %v1309_v50 = vmul.f32 %v3649_v49, %v1293_v2 }
 0xdf6   :  { %v1315_v59 = vmul.f32 %v1314_v51, %v1309_v50 }
 0xdf7   :  { %v3651_v54 = vpop.eup %3650 }
 0xdf8   :  { %v1310_v56 = vmul.f32 %v3651_v54, %v1294_v57  ;;  %v1321_v0 = vadd.f32 %v1320_v60, %v1315_v59 }
 0xdfa   :  { %v1316_v61 = vmul.f32 %v1314_v51, %v1310_v56 }
 0xdfc   :  { %v1322_v4 = vadd.f32 %v1320_v60, %v1316_v61 }
 0xdfe   :  { %v1323_v5 = vpack.c.bf16 %v1322_v4, %v1321_v0  ;;  %v3586_v0 = vld [vmem:[%s4584_s2 + $0x74] ss:$8 sps:$4 sm:$0xff]   ;;  %v3584_v4 = vld [vmem:[%s4584_s2 + $0x70] ss:$8 sps:$4 sm:$0xff]  }
 0xdff   :  { %1644 = vmatprep.subr.bf16.mxu1 %v3586_v0 }
 0xe00   :  { %3343 = vmatmul.mubr.msk.bf16.vlgmr.msra.gmra.mxu1 %vm136_vm0, %v1323_v5  ;;  %v3589_v5 = vld [vmem:[%s4584_s2 + $0x64] ss:$8 sps:$4 sm:$0xff]  }
 0xe01   :  { %1668 = vmatprep.mubr.bf16.mxu1 %v3833_v18  ;;  %v3579_v18 = vld [vmem:[%s4588_s6 + $0x20] sm:$0xff]   ;;  %1645 = vmatpush1.bf16.msra.mxu1 %v3584_v4 }
 0xe02   :  { %3353 = vmatpush3.bf16.msra.mxu0 %v3579_v18  ;;  %1646 = vmatprep.subr.bf16.mxu1 %v3589_v5  ;;  %v3595_v18 = vld [vmem:[%s4584_s2 + $0x44] ss:$8 sps:$4 sm:$0xff]  }
 0xe03   :  { %3354 = vmatprep.subr.bf16.mxu0 %v3834_v45 }
 0xe05   :  { %1647 = vmatpush1.bf16.msra.mxu1 %v3587_v6 }
 0xe06   :  { %3355 = vmatpush3.bf16.msra.mxu0 %v3580_v9  ;;  %1648 = vmatprep.subr.bf16.mxu1 %v3592_v7  ;;  %v3593_v9 = vld [vmem:[%s4584_s2 + $0x40] ss:$8 sps:$4 sm:$0xff]   ;;  %s2971_s2 = sshll.u32 %s3842_s17, 4  ;;  %s2972_s2 = int_to_ptr.vmem [resolvable:$true] %s2971_s2 }
 0xe07   :  { %3356 = vmatprep.subr.bf16.mxu0 %v3834_v45  ;;  %p3800_p7 = scmp.lt.s32.totalorder %s2972_s2, %s2972_s2 }
 0xe09   :  { %1649 = vmatpush1.bf16.msra.mxu1 %v3590_v8 }
 0xe0a   :  { %3357 = vmatpush3.bf16.msra.mxu0 %v3581_v10  ;;  %1650 = vmatprep.subr.bf16.mxu1 %v3595_v18 }
 0xe0b   :  { %3358 = vmatprep.subr.bf16.mxu0 %v3834_v45 }
 0xe0d   :  { %1651 = vmatpush1.bf16.msra.mxu1 %v3593_v9 }
 0xe0e   :  { %3359 = vmatpush3.bf16.msra.mxu0 %v3582_v11  ;;  %3366 = vmatprep.subr.bf16.mxu1 %v3834_v45 }
 0xe0f   :  { %3360 = vmatprep.subr.bf16.mxu0 %v3834_v45 }
 0xe12   :  { %3361 = vmatpush3.bf16.msra.mxu0 %v3583_v12 }
 0xe13   :  { %3378 = vmatprep.subr.bf16.mxu0 %v3834_v45 }
 0xec0   :  { %v1397_v62 = vpop.f32.mrf.mxu1 }
 0xec1   :  { %v1398_v16 = vadd.f32 %v1397_v62, %v1335_v15 }
 0xec2   :  { %v3344_v17 = vpop.f32.mrf.mxu1 }
 0xec3   :  { %v3025_v19 = vmul.f32 -1.702, %v1398_v16  ;;  %v4289_v17 = vld [vmem:[#allocation8 + $0x8] sm:$0xff] }
 0xec4   :  { %v1400_v20 = vpop.f32.mrf.mxu1 }
 0xec5   :  { %v1408_v23 = vmul.f32 1.442695, %v3025_v19  ;;  %v1401_v24 = vadd.f32 %v1400_v20, %v1335_v15 }
 0xec6   :  { %v3345_v25 = vpop.f32.mrf.mxu1 }
 0xec7   :  { %3652 = vpow2.f32 %v1408_v23  ;;  %v3026_v26 = vmul.f32 -1.702, %v1401_v24  ;;  %v1561_v23 = vrot.slane %v4289_v17, %v3948_v31 }
 0xec9   :  { %v1410_v27 = vmul.f32 1.442695, %v3026_v26 }
 0xecb   :  { %3654 = vpow2.f32 %v1410_v27  ;;  %v1567_v27 = vrot.slane %v4289_v17, %v3955_v36 }
 0xed4   :  { %v3653_v1 = vpop.eup %3652 }
 0xed5   :  { %v1412_v58 = vadd.f32 1.0, %v3653_v1 }
 0xed7   :  { %3656 = vrcp.f32 %v1412_v58 }
 0xed8   :  { %v3655_v63 = vpop.eup %3654 }
 0xed9   :  { %v1413_v2 = vadd.f32 1.0, %v3655_v63 }
 0xedb   :  { %3658 = vrcp.f32 %v1413_v2 }
 0xee4   :  { %v3657_v29 = vpop.eup %3656 }
 0xee5   :  { %v1418_v33 = vmul.f32 %v3657_v29, %v1398_v16  ;;  %v1581_v29 = vld [vmem:[#allocation5 + $0x2] sm:$0x3] }
 0xee8   :  { %v3659_v32 = vpop.eup %3658 }
 0xee9   :  { %v1419_v34 = vmul.f32 %v3659_v32, %v1401_v24  ;;  %v1586_v32 = vrot.slane %v1581_v29, %v3948_v31 }
 0xeeb   :  { %v1420_v57 = vpack.c.bf16 %v1419_v34, %v1418_v33  ;;  %v1590_v33 = vrot.slane %v1581_v29, %v3955_v36 }
 0xeed   :  { %3363 = vmatmul.mubr.bf16.vlgmr.msra.gmra.mxu0 %v1420_v57 }
 0xeee   :  { %3380 = vmatprep.mubr.msk.bf16.mxu0 %vm3835_vm1, %v3834_v45 }
 0xfad   :  { %v1523_v39 = vpop.f32.mrf.mxu0 }
 0xfae   :  { %v1524_v55 = vadd.f32 %v1523_v39, %v1440_v38 }
 0xfaf   :  { %v3364_v40 = vpop.f32.mrf.mxu0 }
 0xfb0   :  { %v4251_v41 = vadd.f32 %v1524_v55, %v4184_v21 }
 0xfb1   :  { %v1526_v42 = vpop.f32.mrf.mxu0 }
 0xfb2   :  { %v1527_v43 = vadd.f32 %v1526_v42, %v1440_v38  ;;  %v1532_v44 = vsel %vm136_vm0, %v4251_v41, 0.0 }
 0xfb3   :  { %1533 = vadd.xlane.f32.xlu1 %v1532_v44  ;;  %v3365_v52 = vpop.f32.mrf.mxu0 }
 0xfb4   :  { %v4256_v46 = vadd.f32 %v1527_v43, %v4188_v28 }
 0xfb6   :  { %v1535_v47 = vsel %vm136_vm0, %v4256_v46, 0.0 }
 0xfb7   :  { %1536 = vadd.xlane.f32.xlu0 %v1535_v47 }
0x103c   :  { %v1534_v49 = vpop.xlane.xlu1 %1533 }
0x103d   :  { %v1538_v50 = vmul.f32 0.015625, %v1534_v49 }
0x103f   :  { %v1540_v51 = vsub.f32 %v4251_v41, %v1538_v50 }
0x1040   :  { %v1537_v21 = vpop.xlane.xlu0 %1536 }
0x1041   :  { %v1539_v54 = vmul.f32 0.015625, %v1537_v21  ;;  %v1542_v56 = vmul.f32 %v1540_v51, %v1540_v51 }
0x1043   :  { %v1541_v59 = vsub.f32 %v4256_v46, %v1539_v54  ;;  %v1544_v60 = vsel %vm136_vm0, %v1542_v56, 0.0 }
0x1044   :  { %1545 = vadd.xlane.f32.xlu1 %v1544_v60 }
0x1045   :  { %v1543_v61 = vmul.f32 %v1541_v59, %v1541_v59 }
0x1047   :  { %v1547_v28 = vsel %vm136_vm0, %v1543_v61, 0.0 }
0x1048   :  { %1548 = vadd.xlane.f32.xlu0 %v1547_v28 }
0x10cd   :  { %v1546_v10 = vpop.xlane.xlu1 %1545 }
0x10ce   :  { %v1550_v11 = vmul.f32 0.015625, %v1546_v10 }
0x10d0   :  { %v1552_v12 = vadd.f32 1e-05, %v1550_v11 }
0x10d1   :  { %v1549_v15 = vpop.xlane.xlu0 %1548 }
0x10d2   :  { %3660 = vrsqrt.f32 %v1552_v12  ;;  %v1551_v62 = vmul.f32 0.015625, %v1549_v15 }
0x10d4   :  { %v1553_v16 = vadd.f32 1e-05, %v1551_v62 }
0x10d6   :  { %3662 = vrsqrt.f32 %v1553_v16 }
0x10df   :  { %v3661_v19 = vpop.eup %3660 }
0x10e0   :  { %v1556_v20 = vmul.f32 %v3661_v19, %v1540_v51 }
0x10e2   :  { %v1562_v26 = vmul.f32 %v1561_v23, %v1556_v20 }
0x10e3   :  { %v3663_v24 = vpop.eup %3662 }
0x10e4   :  { %v1557_v25 = vmul.f32 %v3663_v24, %v1541_v59  ;;  %v1568_v58 = vadd.f32 %v1567_v27, %v1562_v26 }
0x10e6   :  { %v1563_v1 = vmul.f32 %v1561_v23, %v1557_v25 }
0x10e8   :  { %v1569_v63 = vadd.f32 %v1567_v27, %v1563_v1 }
0x10ea   :  { %v1570_v2 = vpack.c.bf16 %v1569_v63, %v1568_v58 }
0x10ec   :  { %3051 = vmatmul.mubr.msk.bf16.vlgmr.msra.gmra.mxu1 %vm136_vm0, %v1570_v2 }
0x10ed   :  { %3368 = vmatprep.mubr.msk.bf16.mxu1 %vm3835_vm1, %v3834_v45 }
0x11ac   :  { %v1670_v34 = vpop.f32.mrf.mxu1 }
0x11ad   :  { %v1671_v57 = vadd.f32 %v1670_v34, %v1586_v32 }
0x11ae   :  { %v1672_v37 = vpop.f32.mrf.mxu1 }
0x11af   :  { %v4300_v38 = vpack.c.bf16 %v1671_v57, %v1671_v57  ;;  %v1673_v39 = vadd.f32 %v1672_v37, %v1590_v33 }
0x11b0   :  { %v1674_v55 = vpop.f32.mrf.mxu1 }
0x11b1   :  { %v4302_v40 = vpack.c.bf16 %v1673_v39, %v1673_v39  ;;  %v1675_v42 = vadd.f32 %v1674_v55, %v1586_v32  ;;  %1691 = vrot.lane.b32.xlu1 %v4300_v38, %s3830_s25 }
0x11b2   :  { %v1676_v49 = vpop.f32.mrf.mxu1 }
0x11b3   :  { %v4306_v43 = vpack.c.bf16 %v1675_v42, %v1675_v42  ;;  %v1815_v44 = vsel %vm420_vm2, %v4302_v40, 0  ;;  %v1677_v51 = vadd.f32 %v1676_v49, %v1590_v33 }
0x11b4   :  { %3379 = vmatpush3.bf16.msra.mxu0 %v1815_v44 }
0x11b5   :  { %1739 = vrot.lane.b32.xlu0 %v4306_v43, %s3830_s25  ;;  %3390 = vmatprep.subr.bf16.mxu0 %v3834_v45  ;;  %v4321_v54 = vpack.c.bf16 %v1677_v51, %v1677_v51 }
0x11b7   :  { %v1861_v56 = vsel %vm420_vm2, %v4321_v54, 0 }
0x1223   :  { %v1692_v52 = vpop.permute.xlu1 %1691 }
0x1224   :  { %v1697_v47 = vsel %vm297_vm3, %v1692_v52, 0 }
0x1225   :  { %3367 = vmatpush3.bf16.xpose.msra.mxu1 %v1697_v47 }
0x1226   :  { %3372 = vmatprep.subr.bf16.mxu1 %v3834_v45 }
0x1227   :  { %v1740_v50 = vpop.permute.xlu0 %1739 }
0x1228   :  { %v1745_v21 = vsel %vm297_vm3, %v1740_v50, 0 }
0x122c   :  { %3369 = vmatmul.mubr.msk.bf16.vlgmr.msra.gmra.mxu1 %vm297_vm3, %v4300_v38 }
0x122d   :  { %3373 = vmatpush3.bf16.xpose.msra.mxu1 %v1745_v21  ;;  %3374 = vmatprep.mubr.msk.bf16.mxu1 %vm3835_vm1, %v3834_v45 }
0x122e   :  { %3384 = vmatprep.subr.bf16.mxu1 %v3834_v45 }
0x1234   :  { %3375 = vmatmul.mubr.msk.bf16.vlgmr.msra.gmra.mxu1 %vm297_vm3, %v4306_v43 }
0x1235   :  { %3385 = vmatpush3.bf16.msra.mxu1 %v1861_v56  ;;  %3386 = vmatprep.mubr.msk.bf16.mxu1 %vm3835_vm1, %v3834_v45 }
0x1236   :  { %3396 = vmatprep.subr.bf16.mxu1 %v3834_v45 }
0x12ec   :  { %v1733_v59 = vpop.f32.mrf.mxu1 }
0x12ed   :  { %v1734_v60 = vadd.f32 %v1733_v59, %v4006_v13 }
0x12ee   :  { %v3370_v61 = vpop.f32.mrf.mxu1 }
0x12ef   :  { %v1787_v28 = vsel %vm392_vm5, %v1734_v60, -inf }
0x12f0   :  { %1788 = vmax.xlane.f32.xlu1 %v1787_v28  ;;  %v1736_v0 = vpop.f32.mrf.mxu1 }
0x12f2   :  { %v3371_v4 = vpop.f32.mrf.mxu1 }
0x12f4   :  { %v1781_v5 = vpop.f32.mrf.mxu1 }
0x12f5   :  { %v1782_v6 = vadd.f32 %v1781_v5, %v4011_v22 }
0x12f6   :  { %v3376_v7 = vpop.f32.mrf.mxu1 }
0x12f7   :  { %v1790_v8 = vsel %vm392_vm5, %v1782_v6, -inf }
0x12f8   :  { %1791 = vmax.xlane.f32.xlu0 %v1790_v8  ;;  %v1784_v18 = vpop.f32.mrf.mxu1 }
0x12fa   :  { %v3377_v9 = vpop.f32.mrf.mxu1 }
0x1301   :  { %1905 = vrot.lane.b32.xlu1 %v4300_v38, %s3837_s1 }
0x1379   :  { %v1789_v10 = vpop.xlane.xlu1 %1788 }
0x137a   :  { %v1793_v11 = vsub.f32 %v1734_v60, %v1789_v10 }
0x137c   :  { %v1795_v12 = vmul.f32 1.442695, %v1793_v11 }
0x137d   :  { %v1906_v25 = vpop.permute.xlu1 %1905 }
0x137e   :  { %3664 = vpow2.f32 %v1795_v12  ;;  %v1911_v2 = vsel %vm297_vm3, %v1906_v25, 0 }
0x1381   :  { %v1792_v15 = vpop.xlane.xlu0 %1791 }
0x1382   :  { %v1794_v62 = vsub.f32 %v1782_v6, %v1792_v15 }
0x1384   :  { %v1797_v16 = vmul.f32 1.442695, %v1794_v62 }
0x1386   :  { %3666 = vpow2.f32 %v1797_v16 }
0x138b   :  { %v3665_v19 = vpop.eup %3664 }
0x138c   :  { %v1799_v20 = vsel %vm392_vm5, %v3665_v19, 0.0 }
0x138d   :  { %1800 = vadd.xlane.f32.xlu1 %v1799_v20 }
0x1393   :  { %v3667_v23 = vpop.eup %3666 }
0x1394   :  { %v1802_v24 = vsel %vm392_vm5, %v3667_v23, 0.0 }
0x1395   :  { %1803 = vadd.xlane.f32.xlu0 %v1802_v24 }
0x139e   :  { %1903 = vrot.lane.b32.xlu1 %v4300_v38, %s3838_s30 }
0x13a2   :  { %1953 = vrot.lane.b32.xlu1 %v4306_v43, %s3838_s30 }
0x13ab   :  { %1955 = vrot.lane.b32.xlu0 %v4306_v43, %s3837_s1 }
0x1416   :  { %v1801_v26 = vpop.xlane.xlu1 %1800 }
0x1417   :  { %3668 = vrcp.f32 %v1801_v26 }
0x141a   :  { %v1904_v57 = vpop.permute.xlu1 %1903 }
0x141e   :  { %v1804_v27 = vpop.xlane.xlu0 %1803  ;;  %v1954_v39 = vpop.permute.xlu1 %1953 }
0x141f   :  { %3670 = vrcp.f32 %v1804_v27 }
0x1422   :  { %v1956_v33 = vpop.permute.xlu0 %1955 }
0x1423   :  { %v1961_v37 = vsel %vm297_vm3, %v1956_v33, 0 }
0x1424   :  { %v3669_v1 = vpop.eup %3668 }
0x1425   :  { %v1807_v58 = vmul.f32 %v3669_v1, %v3665_v19 }
0x1427   :  { %v1809_v63 = vpack.c.bf16 %v1807_v58, %v1807_v58 }
0x1429   :  { %3381 = vmatmul.mubr.msk.bf16.vlgmr.msra.gmra.mxu0 %vm392_vm5, %v1809_v63 }
0x142a   :  { %3391 = vmatpush3.bf16.xpose.msra.mxu0 %v1911_v2  ;;  %3392 = vmatprep.mubr.msk.bf16.mxu0 %vm3835_vm1, %v3834_v45 }
0x142b   :  { %3402 = vmatprep.subr.bf16.mxu0 %v3834_v45 }
0x142c   :  { %v3671_v29 = vpop.eup %3670 }
0x142d   :  { %v1808_v32 = vmul.f32 %v3671_v29, %v3667_v23 }
0x142f   :  { %v1810_v34 = vpack.c.bf16 %v1808_v32, %v1808_v32 }
0x1431   :  { %3387 = vmatmul.mubr.msk.bf16.vlgmr.msra.gmra.mxu1 %vm392_vm5, %v1810_v34  ;;  %3393 = vmatmul.mubr.msk.bf16.vlgmr.msra.gmra.mxu0 %vm297_vm3, %v1904_v57 }
0x1432   :  { %3397 = vmatpush3.bf16.xpose.msra.mxu1 %v1961_v37  ;;  %3398 = vmatprep.mubr.msk.bf16.mxu1 %vm3835_vm1, %v3834_v45 }
0x1433   :  { %3408 = vmatprep.subr.bf16.mxu1 %v3834_v45  ;;  %3404 = vmatprep.mubr.msk.bf16.mxu0 %vm3835_vm1, %v3834_v45 }
0x1439   :  { %3399 = vmatmul.mubr.msk.bf16.vlgmr.msra.gmra.mxu1 %vm297_vm3, %v1954_v39 }
0x143a   :  { %3410 = vmatprep.mubr.msk.bf16.mxu1 %vm3835_vm1, %v3834_v45 }
0x14e9   :  { %v4360_v55 = vpop.f32.mrf.mxu0 }
0x14eb   :  { %v3382_v42 = vpop.f32.mrf.mxu0 }
0x14ed   :  { %v1854_v44 = vpop.f32.mrf.mxu0 }
0x14ef   :  { %v3383_v52 = vpop.f32.mrf.mxu0 }
0x14f1   :  { %v4362_v47 = vpop.f32.mrf.mxu1  ;;  %v1947_v49 = vpop.f32.mrf.mxu0 }
0x14f2   :  { %v1948_v50 = vadd.f32 %v1947_v49, %v4006_v13 }
0x14f3   :  { %v3388_v51 = vpop.f32.mrf.mxu1  ;;  %v3394_v21 = vpop.f32.mrf.mxu0 }
0x14f4   :  { %v2003_v56 = vsel %vm392_vm5, %v1948_v50, -inf }
0x14f5   :  { %2004 = vmax.xlane.f32.xlu1 %v2003_v56  ;;  %v1900_v59 = vpop.f32.mrf.mxu1  ;;  %v1950_v60 = vpop.f32.mrf.mxu0 }
0x14f7   :  { %v3389_v61 = vpop.f32.mrf.mxu1  ;;  %v3395_v28 = vpop.f32.mrf.mxu0 }
0x14f9   :  { %v1997_v0 = vpop.f32.mrf.mxu1 }
0x14fa   :  { %v1998_v4 = vadd.f32 %v1997_v0, %v4011_v22 }
0x14fb   :  { %v3400_v5 = vpop.f32.mrf.mxu1 }
0x14fc   :  { %v2006_v6 = vsel %vm392_vm5, %v1998_v4, -inf }
0x14fd   :  { %2007 = vmax.xlane.f32.xlu0 %v2006_v6  ;;  %v2000_v7 = vpop.f32.mrf.mxu1 }
0x14ff   :  { %v3401_v8 = vpop.f32.mrf.mxu1 }
0x1506   :  { %2027 = vrot.lane.b32.xlu1 %v4302_v40, %s3838_s30 }
0x150a   :  { %2125 = vrot.lane.b32.xlu1 %v4300_v38, %s3824_s12 }
0x150e   :  { %2175 = vrot.lane.b32.xlu1 %v4306_v43, %s3824_s12 }
0x1512   :  { %2123 = vrot.lane.b32.xlu1 %v4300_v38, %s3839_s10 }
0x157e   :  { %v2005_v18 = vpop.xlane.xlu1 %2004 }
0x157f   :  { %v2009_v9 = vsub.f32 %v1948_v50, %v2005_v18 }
0x1581   :  { %v2011_v10 = vmul.f32 1.442695, %v2009_v9 }
0x1582   :  { %v2028_v11 = vpop.permute.xlu1 %2027 }
0x1583   :  { %3672 = vpow2.f32 %v2011_v10  ;;  %v2033_v12 = vsel %vm420_vm2, %v2028_v11, 0 }
0x1584   :  { %3403 = vmatpush3.bf16.msra.mxu0 %v2033_v12 }
0x1585   :  { %3414 = vmatprep.subr.bf16.mxu0 %v3834_v45 }
0x1586   :  { %v2008_v15 = vpop.xlane.xlu0 %2007  ;;  %v2126_v63 = vpop.permute.xlu1 %2125 }
0x1587   :  { %v2010_v62 = vsub.f32 %v1998_v4, %v2008_v15  ;;  %v2131_v32 = vsel %vm297_vm3, %v2126_v63, 0 }
0x1589   :  { %v2013_v16 = vmul.f32 1.442695, %v2010_v62 }
0x158a   :  { %v2176_v33 = vpop.permute.xlu1 %2175 }
0x158b   :  { %3674 = vpow2.f32 %v2013_v16  ;;  %v2181_v42 = vsel %vm297_vm3, %v2176_v33, 0 }
0x158e   :  { %v2124_v39 = vpop.permute.xlu1 %2123 }
0x1590   :  { %v3673_v19 = vpop.eup %3672 }
0x1591   :  { %v2015_v20 = vsel %vm392_vm5, %v3673_v19, 0.0 }
0x1592   :  { %2016 = vadd.xlane.f32.xlu0 %v2015_v20 }
0x1598   :  { %v3675_v23 = vpop.eup %3674 }
0x1599   :  { %v2018_v24 = vsel %vm392_vm5, %v3675_v23, 0.0 }
0x159a   :  { %2019 = vadd.xlane.f32.xlu0 %v2018_v24 }
0x15b0   :  { %2075 = vrot.lane.b32.xlu0 %v4321_v54, %s3838_s30 }
0x15b4   :  { %2173 = vrot.lane.b32.xlu0 %v4306_v43, %s3839_s10 }
0x161b   :  { %v2017_v25 = vpop.xlane.xlu0 %2016 }
0x161c   :  { %3676 = vrcp.f32 %v2017_v25 }
0x1623   :  { %v2020_v26 = vpop.xlane.xlu0 %2019 }
0x1624   :  { %3678 = vrcp.f32 %v2020_v26 }
0x1627   :  { %v2076_v27 = vpop.permute.xlu0 %2075 }
0x1628   :  { %v2081_v1 = vsel %vm420_vm2, %v2076_v27, 0 }
0x1629   :  { %v3677_v58 = vpop.eup %3676  ;;  %3409 = vmatpush3.bf16.msra.mxu1 %v2081_v1 }
0x162a   :  { %v2023_v2 = vmul.f32 %v3677_v58, %v3673_v19  ;;  %3420 = vmatprep.subr.bf16.mxu1 %v3834_v45 }
0x162b   :  { %v2174_v44 = vpop.permute.xlu0 %2173 }
0x162c   :  { %v2025_v29 = vpack.c.bf16 %v2023_v2, %v2023_v2 }
0x162e   :  { %3405 = vmatmul.mubr.msk.bf16.vlgmr.msra.gmra.mxu0 %vm392_vm5, %v2025_v29 }
0x162f   :  { %3415 = vmatpush3.bf16.xpose.msra.mxu0 %v2131_v32  ;;  %3416 = vmatprep.mubr.msk.bf16.mxu0 %vm3835_vm1, %v3834_v45 }
0x1630   :  { %3426 = vmatprep.subr.bf16.mxu0 %v3834_v45 }
0x1631   :  { %v3679_v34 = vpop.eup %3678 }
0x1632   :  { %v2024_v57 = vmul.f32 %v3679_v34, %v3675_v23 }
0x1634   :  { %v2026_v37 = vpack.c.bf16 %v2024_v57, %v2024_v57 }
0x1636   :  { %3411 = vmatmul.mubr.msk.bf16.vlgmr.msra.gmra.mxu1 %vm392_vm5, %v2026_v37  ;;  %3417 = vmatmul.mubr.msk.bf16.vlgmr.msra.gmra.mxu0 %vm297_vm3, %v2124_v39 }
0x1637   :  { %3421 = vmatpush3.bf16.xpose.msra.mxu1 %v2181_v42  ;;  %3422 = vmatprep.mubr.msk.bf16.mxu1 %vm3835_vm1, %v3834_v45 }
0x1638   :  { %3432 = vmatprep.subr.bf16.mxu1 %v3834_v45  ;;  %3428 = vmatprep.mubr.msk.bf16.mxu0 %vm3835_vm1, %v3834_v45 }
0x163e   :  { %3423 = vmatmul.mubr.msk.bf16.vlgmr.msra.gmra.mxu1 %vm297_vm3, %v2174_v44 }
0x163f   :  { %3434 = vmatprep.mubr.msk.bf16.mxu1 %vm3835_vm1, %v3834_v45 }
0x16ee   :  { %v4402_v52 = vpop.f32.mrf.mxu0 }
0x16f0   :  { %v3406_v49 = vpop.f32.mrf.mxu0 }
0x16f2   :  { %v2072_v50 = vpop.f32.mrf.mxu0 }
0x16f4   :  { %v3407_v51 = vpop.f32.mrf.mxu0 }
0x16f6   :  { %v4404_v21 = vpop.f32.mrf.mxu1  ;;  %v2167_v56 = vpop.f32.mrf.mxu0 }
0x16f7   :  { %v3541_v59 = vpack.i.bf16 %v4404_v21, %v4402_v52  ;;  %v2168_v60 = vadd.f32 %v2167_v56, %v4006_v13 }
0x16f8   :  { %v3412_v61 = vpop.f32.mrf.mxu1  ;;  %v3418_v28 = vpop.f32.mrf.mxu0 }
0x16f9   :  { %v2223_v0 = vsel %vm392_vm5, %v2168_v60, -inf }
0x16fa   :  { %2224 = vmax.xlane.f32.xlu1 %v2223_v0  ;;  %v2120_v4 = vpop.f32.mrf.mxu1  ;;  %v2170_v5 = vpop.f32.mrf.mxu0 }
0x16fc   :  { %v3413_v6 = vpop.f32.mrf.mxu1  ;;  %v3419_v7 = vpop.f32.mrf.mxu0 }
0x16fe   :  { %v2217_v8 = vpop.f32.mrf.mxu1 }
0x16ff   :  { %v2218_v18 = vadd.f32 %v2217_v8, %v4011_v22 }
0x1700   :  { %v3424_v9 = vpop.f32.mrf.mxu1 }
0x1701   :  { %v2226_v10 = vsel %vm392_vm5, %v2218_v18, -inf }
0x1702   :  { %2227 = vmax.xlane.f32.xlu0 %v2226_v10  ;;  %v2220_v11 = vpop.f32.mrf.mxu1 }
0x1704   :  { %v3425_v12 = vpop.f32.mrf.mxu1 }
0x170b   :  { %2247 = vrot.lane.b32.xlu1 %v4302_v40, %s3839_s10 }
0x170f   :  { %2345 = vrot.lane.b32.xlu1 %v4300_v38, %s3840_s11 }
0x1713   :  { %2395 = vrot.lane.b32.xlu1 %v4306_v43, %s3840_s11 }
0x1717   :  { %2343 = vrot.lane.b32.xlu1 %v4300_v38, %s3841_s5 }
0x1783   :  { %v2225_v15 = vpop.xlane.xlu1 %2224 }
0x1784   :  { %v2229_v62 = vsub.f32 %v2168_v60, %v2225_v15 }
0x1786   :  { %v2231_v16 = vmul.f32 1.442695, %v2229_v62 }
0x1787   :  { %v2248_v19 = vpop.permute.xlu1 %2247 }
0x1788   :  { %3680 = vpow2.f32 %v2231_v16  ;;  %v2253_v20 = vsel %vm420_vm2, %v2248_v19, 0 }
0x1789   :  { %3427 = vmatpush3.bf16.msra.mxu0 %v2253_v20 }
0x178a   :  { %3438 = vmatprep.subr.bf16.mxu0 %v3834_v45 }
0x178b   :  { %v2228_v23 = vpop.xlane.xlu0 %2227  ;;  %v2346_v33 = vpop.permute.xlu1 %2345 }
0x178c   :  { %v2230_v24 = vsub.f32 %v2218_v18, %v2228_v23  ;;  %v2351_v37 = vsel %vm297_vm3, %v2346_v33, 0 }
0x178e   :  { %v2233_v25 = vmul.f32 1.442695, %v2230_v24 }
0x178f   :  { %v2396_v39 = vpop.permute.xlu1 %2395 }
0x1790   :  { %3682 = vpow2.f32 %v2233_v25  ;;  %v2401_v50 = vsel %vm297_vm3, %v2396_v39, 0  ;;  %v3596_v39 = vld [vmem:[%s4586_s4 + $0x38] sm:$0xff]  }
0x1793   :  { %v2344_v49 = vpop.permute.xlu1 %2343 }
0x1795   :  { %v3681_v26 = vpop.eup %3680 }
0x1796   :  { %v2235_v27 = vsel %vm392_vm5, %v3681_v26, 0.0 }
0x1797   :  { %2236 = vadd.xlane.f32.xlu0 %v2235_v27 }
0x179d   :  { %v3683_v1 = vpop.eup %3682 }
0x179e   :  { %v2238_v38 = vsel %vm392_vm5, %v3683_v1, 0.0 }
0x179f   :  { %2239 = vadd.xlane.f32.xlu0 %v2238_v38 }
0x17b5   :  { %2295 = vrot.lane.b32.xlu0 %v4321_v54, %s3839_s10 }
0x17b9   :  { %2393 = vrot.lane.b32.xlu0 %v4306_v43, %s3841_s5 }
0x1820   :  { %v2237_v58 = vpop.xlane.xlu0 %2236 }
0x1821   :  { %3684 = vrcp.f32 %v2237_v58 }
0x1828   :  { %v2240_v63 = vpop.xlane.xlu0 %2239 }
0x1829   :  { %3686 = vrcp.f32 %v2240_v63 }
0x182c   :  { %v2296_v2 = vpop.permute.xlu0 %2295 }
0x182d   :  { %v2301_v29 = vsel %vm420_vm2, %v2296_v2, 0 }
0x182e   :  { %v3685_v32 = vpop.eup %3684  ;;  %3433 = vmatpush3.bf16.msra.mxu1 %v2301_v29 }
0x182f   :  { %v2243_v34 = vmul.f32 %v3685_v32, %v3681_v26  ;;  %3444 = vmatprep.subr.bf16.mxu1 %v3834_v45 }
0x1830   :  { %v2394_v51 = vpop.permute.xlu0 %2393 }
0x1831   :  { %v2245_v57 = vpack.c.bf16 %v2243_v34, %v2243_v34 }
0x1833   :  { %3429 = vmatmul.mubr.msk.bf16.vlgmr.msra.gmra.mxu0 %vm392_vm5, %v2245_v57 }
0x1834   :  { %3439 = vmatpush3.bf16.xpose.msra.mxu0 %v2351_v37  ;;  %3440 = vmatprep.mubr.msk.bf16.mxu0 %vm3835_vm1, %v3834_v45 }
0x1835   :  { %3450 = vmatprep.subr.bf16.mxu0 %v3834_v45 }
0x1836   :  { %v3687_v43 = vpop.eup %3686 }
0x1837   :  { %v2244_v42 = vmul.f32 %v3687_v43, %v3683_v1  ;;  %v3597_v43 = vld [vmem:[%s4586_s4 + $0x30] sm:$0xff]  }
0x1839   :  { %v2246_v44 = vpack.c.bf16 %v2244_v42, %v2244_v42  ;;  %v3598_v42 = vld [vmem:[%s4586_s4 + $0x28] sm:$0xff]  }
0x183b   :  { %3435 = vmatmul.mubr.msk.bf16.vlgmr.msra.gmra.mxu1 %vm392_vm5, %v2246_v44  ;;  %3441 = vmatmul.mubr.msk.bf16.vlgmr.msra.gmra.mxu0 %vm297_vm3, %v2344_v49  ;;  %v3599_v44 = vld [vmem:[%s4586_s4 + $0x20] sm:$0xff]  }
0x183c   :  { %3445 = vmatpush3.bf16.xpose.msra.mxu1 %v2401_v50  ;;  %3446 = vmatprep.mubr.msk.bf16.mxu1 %vm3835_vm1, %v3834_v45 }
0x183d   :  { %3456 = vmatprep.subr.bf16.mxu1 %v3834_v45  ;;  %3452 = vmatprep.mubr.msk.bf16.mxu0 %vm3835_vm1, %v3834_v45 }
0x1843   :  { %3447 = vmatmul.mubr.msk.bf16.vlgmr.msra.gmra.mxu1 %vm297_vm3, %v2394_v51 }
0x1844   :  { %3458 = vmatprep.mubr.msk.bf16.mxu1 %vm3835_vm1, %v3834_v45 }
0x18f3   :  { %v2289_v56 = vpop.f32.mrf.mxu0 }
0x18f5   :  { %v3430_v60 = vpop.f32.mrf.mxu0 }
0x18f7   :  { %v2292_v61 = vpop.f32.mrf.mxu0 }
0x18f9   :  { %v3431_v28 = vpop.f32.mrf.mxu0 }
0x18fb   :  { %v2337_v0 = vpop.f32.mrf.mxu1  ;;  %v2387_v4 = vpop.f32.mrf.mxu0 }
0x18fc   :  { %v2388_v5 = vadd.f32 %v2387_v4, %v4006_v13  ;;  %v3546_v13 = vpack.i.bf16 %v2337_v0, %v2289_v56 }
0x18fd   :  { %v3436_v6 = vpop.f32.mrf.mxu1  ;;  %v3442_v7 = vpop.f32.mrf.mxu0 }
0x18fe   :  { %v2443_v8 = vsel %vm392_vm5, %v2388_v5, -inf }
0x18ff   :  { %2444 = vmax.xlane.f32.xlu1 %v2443_v8  ;;  %v2340_v18 = vpop.f32.mrf.mxu1  ;;  %v2390_v9 = vpop.f32.mrf.mxu0 }
0x1901   :  { %v3437_v10 = vpop.f32.mrf.mxu1  ;;  %v3443_v11 = vpop.f32.mrf.mxu0 }
0x1903   :  { %v2437_v12 = vpop.f32.mrf.mxu1 }
0x1904   :  { %v2438_v15 = vadd.f32 %v2437_v12, %v4011_v22 }
0x1905   :  { %v3448_v62 = vpop.f32.mrf.mxu1 }
0x1906   :  { %v2446_v16 = vsel %vm392_vm5, %v2438_v15, -inf }
0x1907   :  { %2447 = vmax.xlane.f32.xlu0 %v2446_v16  ;;  %v2440_v19 = vpop.f32.mrf.mxu1 }
0x1909   :  { %v3449_v20 = vpop.f32.mrf.mxu1 }
0x1910   :  { %2467 = vrot.lane.b32.xlu1 %v4302_v40, %s3841_s5 }
0x1914   :  { %3542 = vrot.lane.b32.xlu1 %v3541_v59, %s3840_s11 }
0x1918   :  { %3547 = vrot.lane.b32.xlu1 %v3546_v13, %s3824_s12 }
0x1988   :  { %v2445_v23 = vpop.xlane.xlu1 %2444 }
0x1989   :  { %v2449_v24 = vsub.f32 %v2388_v5, %v2445_v23 }
0x198b   :  { %v2451_v22 = vmul.f32 1.442695, %v2449_v24 }
0x198c   :  { %v2468_v25 = vpop.permute.xlu1 %2467 }
0x198d   :  { %3688 = vpow2.f32 %v2451_v22  ;;  %v2473_v26 = vsel %vm420_vm2, %v2468_v25, 0 }
0x198e   :  { %3451 = vmatpush3.bf16.msra.mxu0 %v2473_v26 }
0x198f   :  { %3462 = vmatprep.subr.bf16.mxu0 %v3834_v45 }
0x1990   :  { %v2448_v27 = vpop.xlane.xlu0 %2447  ;;  %v3543_v5 = vpop.permute.xlu1 %3542 }
0x1991   :  { %v2450_v40 = vsub.f32 %v2438_v15, %v2448_v27  ;;  %v3545_v7 = vunpack.i.h.bf16 %v3543_v5  ;;  %v3544_v8 = vunpack.i.l.bf16 %v3543_v5 }
0x1993   :  { %v2453_v1 = vmul.f32 1.442695, %v2450_v40  ;;  %v2588_v11 = vsel %vm297_vm3, %v4362_v47, %v3545_v7  ;;  %v2587_v12 = vsel %vm297_vm3, %v4360_v55, %v3544_v8  ;;  %v2606_v55 = vrot.slane %v4289_v17, %v1213_v3  ;;  %v3604_v8 = vld [vmem:[%s4588_s6 + $0x78] sm:$0xff]  }
0x1994   :  { %v3548_v6 = vpop.permute.xlu1 %3547 }
0x1995   :  { %3690 = vpow2.f32 %v2453_v1  ;;  %v3550_v18 = vunpack.i.h.bf16 %v3548_v6  ;;  %v3549_v9 = vunpack.i.l.bf16 %v3548_v6 }
0x1997   :  { %v2590_v16 = vsel %vm1196_vm6, %v2588_v11, %v3550_v18  ;;  %v2589_v19 = vsel %vm1196_vm6, %v2587_v12, %v3549_v9  ;;  %v3607_v18 = vld [vmem:[%s4588_s6 + $0x60] sm:$0xff]   ;;  %v3608_v9 = vld [vmem:[%s4588_s6 + $0x58] sm:$0xff]   ;;  %v3610_v11 = vld [vmem:[%s4588_s6 + $0x48] sm:$0xff]  }
0x1998   :  { %v3611_v12 = vld [vmem:[%s4588_s6 + $0x40] sm:$0xff]  }
0x199a   :  { %v3689_v38 = vpop.eup %3688 }
0x199b   :  { %v2455_v52 = vsel %vm392_vm5, %v3689_v38, 0.0 }
0x199c   :  { %2456 = vadd.xlane.f32.xlu0 %v2455_v52 }
0x19a2   :  { %v3691_v21 = vpop.eup %3690 }
0x19a3   :  { %v2458_v59 = vsel %vm392_vm5, %v3691_v21, 0.0 }
0x19a4   :  { %2459 = vadd.xlane.f32.xlu0 %v2458_v59 }
0x19ba   :  { %2515 = vrot.lane.b32.xlu0 %v4321_v54, %s3841_s5 }
0x1a25   :  { %v2457_v58 = vpop.xlane.xlu0 %2456 }
0x1a26   :  { %3692 = vrcp.f32 %v2457_v58 }
0x1a2d   :  { %v2460_v63 = vpop.xlane.xlu0 %2459 }
0x1a2e   :  { %3694 = vrcp.f32 %v2460_v63 }
0x1a31   :  { %v2516_v2 = vpop.permute.xlu0 %2515 }
0x1a32   :  { %v2521_v29 = vsel %vm420_vm2, %v2516_v2, 0 }
0x1a33   :  { %v3693_v32 = vpop.eup %3692  ;;  %3457 = vmatpush3.bf16.msra.mxu1 %v2521_v29 }
0x1a34   :  { %v2463_v33 = vmul.f32 %v3693_v32, %v3689_v38  ;;  %3474 = vmatprep.subr.bf16.mxu1 %v3834_v45 }
0x1a36   :  { %v2465_v34 = vpack.c.bf16 %v2463_v33, %v2463_v33  ;;  %v3600_v33 = vld [vmem:[#allocation7 + $0x38] sm:$0xff]  }
0x1a38   :  { %3453 = vmatmul.mubr.msk.bf16.vlgmr.msra.gmra.mxu0 %vm392_vm5, %v2465_v34  ;;  %v3601_v34 = vld [vmem:[#allocation7 + $0x30] sm:$0xff]  }
0x1a39   :  { %3470 = vmatprep.mubr.msk.bf16.mxu0 %vm3835_vm1, %v3834_v45  ;;  %3463 = vmatpush3.bf16.msra.mxu0 %v3596_v39 }
0x1a3a   :  { %3464 = vmatprep.subr.bf16.mxu0 %v3834_v45 }
0x1a3b   :  { %v3695_v57 = vpop.eup %3694 }
0x1a3c   :  { %v2464_v54 = vmul.f32 %v3695_v57, %v3691_v21  ;;  %v3602_v57 = vld [vmem:[#allocation7 + $0x28] sm:$0xff]  }
0x1a3d   :  { %3465 = vmatpush3.bf16.msra.mxu0 %v3597_v43 }
0x1a3e   :  { %v2466_v37 = vpack.c.bf16 %v2464_v54, %v2464_v54  ;;  %3466 = vmatprep.subr.bf16.mxu0 %v3834_v45  ;;  %v3603_v54 = vld [vmem:[#allocation7 + $0x20] sm:$0xff]  }
0x1a40   :  { %3459 = vmatmul.mubr.msk.bf16.vlgmr.msra.gmra.mxu1 %vm392_vm5, %v2466_v37 }
0x1a41   :  { %3482 = vmatprep.mubr.msk.bf16.mxu1 %vm3835_vm1, %v3834_v45  ;;  %3467 = vmatpush3.bf16.msra.mxu0 %v3598_v42 }
0x1a42   :  { %3468 = vmatprep.subr.bf16.mxu0 %v3834_v45  ;;  %3475 = vmatpush3.bf16.msra.mxu1 %v3600_v33 }
0x1a43   :  { %3476 = vmatprep.subr.bf16.mxu1 %v3834_v45 }
0x1a45   :  { %3469 = vmatpush3.bf16.msra.mxu0 %v3599_v44 }
0x1a46   :  { %3486 = vmatprep.subr.bf16.mxu0 %v3834_v45  ;;  %3477 = vmatpush3.bf16.msra.mxu1 %v3601_v34 }
0x1a47   :  { %3478 = vmatprep.subr.bf16.mxu1 %v3834_v45 }
0x1a4a   :  { %3479 = vmatpush3.bf16.msra.mxu1 %v3602_v57 }
0x1a4b   :  { %3480 = vmatprep.subr.bf16.mxu1 %v3834_v45 }
0x1a4e   :  { %3481 = vmatpush3.bf16.msra.mxu1 %v3603_v54 }
0x1af8   :  { %v2509_v49 = vpop.f32.mrf.mxu0 }
0x1afa   :  { %v3454_v50 = vpop.f32.mrf.mxu0 }
0x1afc   :  { %v2512_v51 = vpop.f32.mrf.mxu0 }
0x1afe   :  { %v3455_v56 = vpop.f32.mrf.mxu0 }
0x1aff   :  { %v2706_v56 = vrot.slane %v4289_v17, %v1313_v48  ;;  %v3605_v48 = vld [vmem:[%s4588_s6 + $0x70] sm:$0xff]  }
0x1b00   :  { %v2557_v60 = vpop.f32.mrf.mxu1 }
0x1b01   :  { %v3551_v61 = vpack.i.bf16 %v2557_v60, %v2509_v49 }
0x1b02   :  { %v3460_v28 = vpop.f32.mrf.mxu1 }
0x1b03   :  { %3552 = vrot.lane.b32.xlu1 %v3551_v61, %s3837_s1 }
0x1b04   :  { %v2560_v0 = vpop.f32.mrf.mxu1 }
0x1b05   :  { %v2712_v0 = vrot.slane %v4289_v17, %v1319_v53  ;;  %v3606_v53 = vld [vmem:[%s4588_s6 + $0x68] sm:$0xff]  }
0x1b06   :  { %v3461_v4 = vpop.f32.mrf.mxu1 }
0x1b75   :  { %v3553_v10 = vpop.permute.xlu1 %3552 }
0x1b76   :  { %v3555_v15 = vunpack.i.h.bf16 %v3553_v10  ;;  %v3554_v62 = vunpack.i.l.bf16 %v3553_v10  ;;  %v3609_v10 = vld [vmem:[%s4588_s6 + $0x50] sm:$0xff]  }
0x1b78   :  { %v2592_v20 = vsel %vm1199_vm7, %v2590_v16, %v3555_v15  ;;  %v2591_v13 = vsel %vm1199_vm7, %v2589_v19, %v3554_v62  ;;  %v2728_v15 = vrot.slane %v4289_v17, %v1334_v14 }
0x1b79   :  { %v2593_v23 = vpack.c.bf16 %v2592_v20, %v2591_v13 }
0x1b7b   :  { %3471 = vmatmul.mubr.msk.bf16.vlgmr.msra.gmra.mxu0 %vm136_vm0, %v2593_v23 }
0x1b7c   :  { %3502 = vmatprep.mubr.msk.bf16.mxu0 %vm3835_vm1, %v3834_v45  ;;  %3487 = vmatpush3.bf16.msra.mxu0 %v3604_v8 }
0x1b7d   :  { %3488 = vmatprep.subr.bf16.mxu0 %v3834_v45 }
0x1b80   :  { %3489 = vmatpush3.bf16.msra.mxu0 %v3605_v48 }
0x1b81   :  { %3490 = vmatprep.subr.bf16.mxu0 %v3834_v45 }
0x1b84   :  { %3491 = vmatpush3.bf16.msra.mxu0 %v3606_v53 }
0x1b85   :  { %3492 = vmatprep.subr.bf16.mxu0 %v3834_v45 }
0x1b88   :  { %3493 = vmatpush3.bf16.msra.mxu0 %v3607_v18 }
0x1b89   :  { %3494 = vmatprep.subr.bf16.mxu0 %v3834_v45 }
0x1b8c   :  { %3495 = vmatpush3.bf16.msra.mxu0 %v3608_v9 }
0x1b8d   :  { %3496 = vmatprep.subr.bf16.mxu0 %v3834_v45 }
0x1b90   :  { %3497 = vmatpush3.bf16.msra.mxu0 %v3609_v10 }
0x1b91   :  { %3498 = vmatprep.subr.bf16.mxu0 %v3834_v45 }
0x1b94   :  { %3499 = vmatpush3.bf16.msra.mxu0 %v3610_v11 }
0x1b95   :  { %3500 = vmatprep.subr.bf16.mxu0 %v3834_v45 }
0x1b98   :  { %3501 = vmatpush3.bf16.msra.mxu0 %v3611_v12 }
0x1c3b   :  { %v2668_v47 = vpop.f32.mrf.mxu0 }
0x1c3c   :  { %v2669_v24 = vadd.f32 %v2668_v47, %v2606_v55 }
0x1c3d   :  { %v3472_v22 = vpop.f32.mrf.mxu0 }
0x1c3e   :  { %v4503_v25 = vadd.f32 %v2669_v24, %v4251_v41 }
0x1c3f   :  { %v2671_v26 = vpop.f32.mrf.mxu0 }
0x1c40   :  { %v2672_v27 = vadd.f32 %v2671_v26, %v2606_v55  ;;  %v2677_v40 = vsel %vm136_vm0, %v4503_v25, 0.0 }
0x1c41   :  { %2678 = vadd.xlane.f32.xlu0 %v2677_v40  ;;  %v3473_v1 = vpop.f32.mrf.mxu0 }
0x1c42   :  { %v4508_v38 = vadd.f32 %v2672_v27, %v4256_v46 }
0x1c44   :  { %v2680_v52 = vsel %vm136_vm0, %v4508_v38, 0.0 }
0x1c45   :  { %2681 = vadd.xlane.f32.xlu1 %v2680_v52 }
0x1cca   :  { %v2679_v3 = vpop.xlane.xlu0 %2678 }
0x1ccb   :  { %v2683_v21 = vmul.f32 0.015625, %v2679_v3 }
0x1ccd   :  { %v2685_v59 = vsub.f32 %v4503_v25, %v2683_v21 }
0x1cce   :  { %v2682_v41 = vpop.xlane.xlu1 %2681 }
0x1ccf   :  { %v2684_v58 = vmul.f32 0.015625, %v2682_v41  ;;  %v2687_v63 = vmul.f32 %v2685_v59, %v2685_v59 }
0x1cd1   :  { %v2686_v2 = vsub.f32 %v4508_v38, %v2684_v58  ;;  %v2689_v29 = vsel %vm136_vm0, %v2687_v63, 0.0 }
0x1cd2   :  { %2690 = vadd.xlane.f32.xlu0 %v2689_v29 }
0x1cd3   :  { %v2688_v32 = vmul.f32 %v2686_v2, %v2686_v2 }
0x1cd5   :  { %v2692_v46 = vsel %vm136_vm0, %v2688_v32, 0.0 }
0x1cd6   :  { %2693 = vadd.xlane.f32.xlu0 %v2692_v46 }
0x1d5b   :  { %v2691_v37 = vpop.xlane.xlu0 %2690 }
0x1d5c   :  { %v2695_v39 = vmul.f32 0.015625, %v2691_v37 }
0x1d5e   :  { %v2697_v43 = vadd.f32 1e-05, %v2695_v39 }
0x1d5f   :  { %v2694_v42 = vpop.xlane.xlu0 %2693 }
0x1d60   :  { %3696 = vrsqrt.f32 %v2697_v43  ;;  %v2696_v44 = vmul.f32 0.015625, %v2694_v42 }
0x1d62   :  { %v2698_v49 = vadd.f32 1e-05, %v2696_v44 }
0x1d64   :  { %3698 = vrsqrt.f32 %v2698_v49 }
0x1d6d   :  { %v3697_v50 = vpop.eup %3696 }
0x1d6e   :  { %v2701_v51 = vmul.f32 %v3697_v50, %v2685_v59  ;;  %v2834_v59 = vrot.slane %v4289_v17, %v1439_v35 }
0x1d70   :  { %v2707_v28 = vmul.f32 %v2706_v56, %v2701_v51 }
0x1d71   :  { %v3699_v60 = vpop.eup %3698 }
0x1d72   :  { %v2702_v61 = vmul.f32 %v3699_v60, %v2686_v2  ;;  %v2713_v5 = vadd.f32 %v2712_v0, %v2707_v28 }
0x1d74   :  { %v2708_v4 = vmul.f32 %v2706_v56, %v2702_v61  ;;  %v135_v61 = vld [vmem:[%s4590_s8] sm:$0x3]  ;;  %s3795_s8 = scalar_lea.vmem %s2972_s2, 256 }
0x1d75   :  { %v2955_v28 = vrot.slane %v135_v61, %v3948_v31  ;;  %p3796_p6 = scmp.ne.s32.totalorder %s2972_s2, %s3795_s8  ;;  %p3801_p8 = scmp.lt.s32.totalorder %s3795_s8, %s3795_s8 }
0x1d76   :  { %v2714_v6 = vadd.f32 %v2712_v0, %v2708_v4 }
0x1d77   :  { %p3802_p9 = por %p3801_p8, %p3800_p7 }
0x1d78   :  { %v2715_v7 = vpack.c.bf16 %v2714_v6, %v2713_v5  ;;  %v2961_v5 = vrot.slane %v135_v61, %v3955_v36 }
0x1d79   :  { %p3803_p10 = pnand %p3802_p9, %p3796_p6 }
0x1d7a   :  { %3483 = vmatmul.mubr.msk.bf16.vlgmr.msra.gmra.mxu1 %vm136_vm0, %v2715_v7 }
0x1e3a   :  { %v2790_v62 = vpop.f32.mrf.mxu1 }
0x1e3b   :  { %v2791_v16 = vadd.f32 %v2790_v62, %v2728_v15 }
0x1e3c   :  { %v3484_v19 = vpop.f32.mrf.mxu1 }
0x1e3d   :  { %v3090_v20 = vmul.f32 -1.702, %v2791_v16 }
0x1e3e   :  { %v2793_v13 = vpop.f32.mrf.mxu1 }
0x1e3f   :  { %v2801_v23 = vmul.f32 1.442695, %v3090_v20  ;;  %v2794_v55 = vadd.f32 %v2793_v13, %v2728_v15 }
0x1e40   :  { %v3485_v47 = vpop.f32.mrf.mxu1 }
0x1e41   :  { %3700 = vpow2.f32 %v2801_v23  ;;  %v3091_v24 = vmul.f32 -1.702, %v2794_v55 }
0x1e43   :  { %v2803_v45 = vmul.f32 1.442695, %v3091_v24 }
0x1e45   :  { %3702 = vpow2.f32 %v2803_v45 }
0x1e4e   :  { %v3701_v22 = vpop.eup %3700 }
0x1e4f   :  { %v2805_v26 = vadd.f32 1.0, %v3701_v22 }
0x1e51   :  { %3704 = vrcp.f32 %v2805_v26 }
0x1e52   :  { %v3703_v27 = vpop.eup %3702 }
0x1e53   :  { %v2806_v40 = vadd.f32 1.0, %v3703_v27 }
0x1e55   :  { %3706 = vrcp.f32 %v2806_v40 }
0x1e5e   :  { %v3705_v1 = vpop.eup %3704 }
0x1e5f   :  { %v2811_v52 = vmul.f32 %v3705_v1, %v2791_v16 }
0x1e62   :  { %v3707_v14 = vpop.eup %3706 }
0x1e63   :  { %v2812_v3 = vmul.f32 %v3707_v14, %v2794_v55 }
0x1e65   :  { %v2813_v21 = vpack.c.bf16 %v2812_v3, %v2811_v52 }
0x1e67   :  { %3503 = vmatmul.mubr.bf16.vlgmr.msra.gmra.mxu0 %v2813_v21 }
0x1f27   :  { %v2917_v41 = vpop.f32.mrf.mxu0 }
0x1f28   :  { %v2918_v58 = vadd.f32 %v2917_v41, %v2834_v59 }
0x1f29   :  { %v3504_v63 = vpop.f32.mrf.mxu0 }
0x1f2a   :  { %v2924_v2 = vadd.f32 %v2918_v58, %v4503_v25 }
0x1f2b   :  { %v2920_v29 = vpop.f32.mrf.mxu0 }
0x1f2c   :  { %v2921_v32 = vadd.f32 %v2920_v29, %v2834_v59  ;;  %v2926_v46 = vsel %vm136_vm0, %v2924_v2, 0.0 }
0x1f2d   :  { %2927 = vadd.xlane.f32.xlu0 %v2926_v46  ;;  %v3505_v33 = vpop.f32.mrf.mxu0 }
0x1f2e   :  { %v2925_v34 = vadd.f32 %v2921_v32, %v4508_v38 }
0x1f30   :  { %v2929_v57 = vsel %vm136_vm0, %v2925_v34, 0.0 }
0x1f31   :  { %2930 = vadd.xlane.f32.xlu1 %v2929_v57 }
0x1fb6   :  { %v2928_v54 = vpop.xlane.xlu0 %2927 }
0x1fb7   :  { %v2932_v30 = vmul.f32 0.015625, %v2928_v54 }
0x1fb9   :  { %v2934_v37 = vsub.f32 %v2924_v2, %v2932_v30 }
0x1fba   :  { %v2931_v35 = vpop.xlane.xlu1 %2930 }
0x1fbb   :  { %v2933_v17 = vmul.f32 0.015625, %v2931_v35  ;;  %v2936_v39 = vmul.f32 %v2934_v37, %v2934_v37 }
0x1fbd   :  { %v2935_v43 = vsub.f32 %v2925_v34, %v2933_v17  ;;  %v2938_v25 = vsel %vm136_vm0, %v2936_v39, 0.0 }
0x1fbe   :  { %2939 = vadd.xlane.f32.xlu0 %v2938_v25 }
0x1fbf   :  { %v2937_v42 = vmul.f32 %v2935_v43, %v2935_v43 }
0x1fc1   :  { %v2941_v44 = vsel %vm136_vm0, %v2937_v42, 0.0 }
0x1fc2   :  { %2942 = vadd.xlane.f32.xlu1 %v2941_v44 }
0x2047   :  { %v2940_v49 = vpop.xlane.xlu0 %2939 }
0x2048   :  { %v2944_v50 = vmul.f32 0.015625, %v2940_v49 }
0x204a   :  { %v2946_v38 = vadd.f32 1e-05, %v2944_v50 }
0x204b   :  { %v2943_v51 = vpop.xlane.xlu1 %2942 }
0x204c   :  { %3708 = vrsqrt.f32 %v2946_v38  ;;  %v2945_v56 = vmul.f32 0.015625, %v2943_v51 }
0x204e   :  { %v2947_v60 = vadd.f32 1e-05, %v2945_v56 }
0x2050   :  { %3710 = vrsqrt.f32 %v2947_v60 }
0x2059   :  { %v3709_v0 = vpop.eup %3708 }
0x205a   :  { %v2950_v4 = vmul.f32 %v3709_v0, %v2934_v37 }
0x205c   :  { %v2956_v6 = vmul.f32 %v2955_v28, %v2950_v4 }
0x205d   :  { %v3711_v7 = vpop.eup %3710 }
0x205e   :  { %v2951_v8 = vmul.f32 %v3711_v7, %v2935_v43  ;;  %v2962_v48 = vadd.f32 %v2961_v5, %v2956_v6 }
0x2060   :  { %v2957_v53 = vmul.f32 %v2955_v28, %v2951_v8  ;;  %2964 = vst.msk [vmem:[#allocation10] sm:$0xff] %vm136_vm0, %v2962_v48 }
0x2062   :  { %v2963_v18 = vadd.f32 %v2961_v5, %v2957_v53 }
0x2064   :  { %2965 = vst.msk [vmem:[#allocation10 + $0x8] sm:$0xff] %vm136_vm0, %v2963_v18 }
0x2065   :  { %3806 = shalt.err (!%p3803_p10)
}
0x2066   :  { %2977 = dma.vmem_to_hbm [thread:$0]  %s2972_s2, 256, %s4591_s9, [#allocation4], %s3827_s19, %s3827_s19, %s3828_s20  }
0x2067   :  { %3821 = dma.done.wait [#allocation4], 256  }
0x2068   :  { %3822 = vsyncadd [#allocation4], 4294967040 }
0x2069   :  { %2981 = vsyncpa [#allocation3], 1 }
0x206a   :  { %2982 = vsyncpa [#allocation6], 1 }
0x206b   :  { %2983 = vsyncpa [#allocation9], 1 }
0x206c   :  { %2984 = vsyncpa [#allocation4], 1 }

</bundles_post_ra>
